<compile_context>
chip_gen: v7x
topology: tpu7x:2x2x1
jax: 0.10.0
libtpu: 0.0.40
codegen_flags: <defaults>
</compile_context>

<pallas_src>
import functools

import jax
import jax.numpy as jnp
from jax import lax
from jax.experimental import pallas as pl
from jax.experimental.pallas import tpu as pltpu


def _dwconv_block_kernel(x_ref, w0_ref, b0_ref, wdw_ref, bdw_ref, w1_ref, b1_ref,
                         masks_ref, o_ref, *, H, W, hidden, eps):
    """Full DWConvBlock forward for one batch element, channel-first / lane-dense.

    x_ref     : (1, Cin, HW)   input block (HW = H*W on the lane axis)
    w0_ref    : (hidden, Cin)  1x1 conv0 weight
    b0_ref    : (hidden, 1)
    wdw_ref   : (hidden, 9)    depthwise 3x3 taps, row-major (ki*3+kj)
    bdw_ref   : (hidden, 1)
    w1_ref    : (Cin, hidden)  1x1 conv1 weight
    b1_ref    : (Cin, 1)
    masks_ref : (4, HW) f32    [row>=1, row<=H-2, col>=1, col<=W-2] boundary masks
    o_ref     : (1, Cin, HW)
    """
    HW = H * W

    def inorm(t):  # InstanceNorm over spatial (lane) axis, biased var, no affine
        mu = jnp.mean(t, axis=-1, keepdims=True)
        ex2 = jnp.mean(t * t, axis=-1, keepdims=True)
        var = ex2 - mu * mu
        return (t - mu) * lax.rsqrt(var + eps)

    def silu(t):
        return t * jax.nn.sigmoid(t)

    def pointwise(w, b, t):
        # w: (Cout, K), t: (K, HW) -> (Cout, HW)
        K = t.shape[0]
        if K <= 8:
            # Tiny contraction: VPU broadcast-FMA, skip the MXU push/pop entirely.
            acc = w[:, 0:1] * t[0:1, :]
            for c in range(1, K):
                acc = acc + w[:, c:c + 1] * t[c:c + 1, :]
        else:
            acc = jnp.dot(w, t, preferred_element_type=jnp.float32)
        return acc + b

    x2 = x_ref[0].astype(jnp.float32)                     # (Cin, HW)

    # --- pw_conv0: 1x1 conv + InstanceNorm + SiLU ---
    feat = silu(inorm(pointwise(w0_ref[...], b0_ref[...], x2)))   # (hidden, HW)

    # --- depthwise 3x3 (stride 1, pad 1, groups=hidden) via lane rolls + masks ---
    masks = masks_ref[...]                                # (4, HW)
    row_m = {-1: masks[0:1, :], 1: masks[1:2, :]}
    col_m = {-1: masks[2:3, :], 1: masks[3:4, :]}
    wdw = wdw_ref[...]                                    # (hidden, 9)

    # center tap initializes the accumulator; bias folded in (saves a zero-init + add)
    dw = wdw[:, 4:5] * feat + bdw_ref[...]
    for di in (-1, 0, 1):
        for dj in (-1, 0, 1):
            if di == 0 and dj == 0:
                continue
            k = (di + 1) * 3 + (dj + 1)
            # out[p] needs feat[p + di*W + dj]  =>  roll by the negated offset (mod HW)
            shift = (-(di * W + dj)) % HW
            shifted = pltpu.roll(feat, shift, axis=1)     # XLU lane rotation
            m = None
            if di != 0:
                m = row_m[di]
            if dj != 0:
                m = col_m[dj] if m is None else m * col_m[dj]
            dw = dw + wdw[:, k:k + 1] * (shifted * m)

    # residual + SiLU  (act0)
    feat = silu(feat + inorm(dw))                         # (hidden, HW)

    # --- pw_conv1: 1x1 conv + InstanceNorm ---
    y = inorm(pointwise(w1_ref[...], b1_ref[...], feat))  # (Cin, HW)

    # residual with input + SiLU  (act1)
    o_ref[0] = silu(x2 + y).astype(o_ref.dtype)


def dwconv_block(x_nchw, params, *, eps=1e-6):
    """x_nchw: (B, Cin, H, W) float32.  Returns (B, Cin, H, W)."""
    B, Cin, H, W = x_nchw.shape
    hidden = params["w0"].shape[0]
    HW = H * W

    # parameter plumbing (plain JAX glue; channel-first orientation, no transposes of x)
    w0 = params["w0"].reshape(hidden, Cin)
    b0 = params["b0"].reshape(hidden, 1)
    wdw = params["wdw"].reshape(hidden, 9)
    bdw = params["bdw"].reshape(hidden, 1)
    w1 = params["w1"].reshape(Cin, hidden)
    b1 = params["b1"].reshape(Cin, 1)

    # boundary-validity masks for the 3x3 taps (precomputed, tiny, grid-invariant)
    row_id = jnp.repeat(jnp.arange(H), W)
    col_id = jnp.tile(jnp.arange(W), H)
    masks = jnp.stack([row_id >= 1, row_id <= H - 2,
                       col_id >= 1, col_id <= W - 2]).astype(jnp.float32)  # (4, HW)

    # free layout-preserving reshape (collapse trailing dims), stays NCHW in HBM
    x_flat = x_nchw.reshape(B, Cin, HW)

    kernel = functools.partial(_dwconv_block_kernel, H=H, W=W, hidden=hidden, eps=eps)

    # scoped-VMEM request sized from the per-step footprint (with headroom), capped for v7x
    f32 = 4
    per_step = f32 * (4 * Cin * HW            # in/out blocks, double-buffered
                      + 8 * hidden * HW       # feat, dw, rolled temps + headroom
                      + hidden * (Cin + 9 + 2) + Cin * (hidden + 1) + 4 * HW)
    vmem_limit = int(min(max(2 * per_step, 32 * 1024 * 1024), 64 * 1024 * 1024))

    out_flat = pl.pallas_call(
        kernel,
        out_shape=jax.ShapeDtypeStruct((B, Cin, HW), jnp.float32),
        grid=(B,),
        in_specs=[
            pl.BlockSpec((1, Cin, HW), lambda b: (b, 0, 0)),
            pl.BlockSpec((hidden, Cin), lambda b: (0, 0)),
            pl.BlockSpec((hidden, 1), lambda b: (0, 0)),
            pl.BlockSpec((hidden, 9), lambda b: (0, 0)),
            pl.BlockSpec((hidden, 1), lambda b: (0, 0)),
            pl.BlockSpec((Cin, hidden), lambda b: (0, 0)),
            pl.BlockSpec((Cin, 1), lambda b: (0, 0)),
            pl.BlockSpec((4, HW), lambda b: (0, 0)),
        ],
        out_specs=pl.BlockSpec((1, Cin, HW), lambda b: (b, 0, 0)),
        compiler_params=pltpu.CompilerParams(
            dimension_semantics=("parallel",),
            vmem_limit_bytes=vmem_limit),
    )(x_flat, w0, b0, wdw, bdw, w1, b1, masks)

    return out_flat.reshape(B, Cin, H, W)


def _reference_forward(x, p, eps=1e-6):
    """Pure-JAX reference matching the PyTorch module (NCHW)."""
    hidden = p["w0"].shape[0]

    def inorm(t):
        mu = jnp.mean(t, axis=(2, 3), keepdims=True)
        var = jnp.mean((t - mu) ** 2, axis=(2, 3), keepdims=True)
        return (t - mu) * lax.rsqrt(var + eps)

    def silu(t):
        return t * jax.nn.sigmoid(t)

    w0 = p["w0"].reshape(hidden, -1)
    w1 = p["w1"].reshape(-1, hidden)

    feat = jnp.einsum("oc,bchw->bohw", w0, x) + p["b0"][None, :, None, None]
    feat = silu(inorm(feat))

    dw = lax.conv_general_dilated(
        feat, p["wdw"], window_strides=(1, 1), padding=((1, 1), (1, 1)),
        dimension_numbers=("NCHW", "OIHW", "NCHW"), feature_group_count=hidden)
    dw = dw + p["bdw"][None, :, None, None]
    feat = silu(feat + inorm(dw))

    y = jnp.einsum("oc,bchw->bohw", w1, feat) + p["b1"][None, :, None, None]
    y = inorm(y)
    return silu(x + y)


if __name__ == "__main__":
    B, Cin, H, W = 2, 4, 16, 16
    hidden = 32

    key = jax.random.PRNGKey(0)
    ks = jax.random.split(key, 8)

    # Deterministic synthetic parameters (shapes follow nn.Conv2d in __init__).
    params = {
        "w0": 0.2 * jax.random.normal(ks[0], (hidden, Cin, 1, 1), jnp.float32),
        "b0": 0.1 * jax.random.normal(ks[1], (hidden,), jnp.float32),
        "wdw": 0.2 * jax.random.normal(ks[2], (hidden, 1, 3, 3), jnp.float32),
        "bdw": 0.1 * jax.random.normal(ks[3], (hidden,), jnp.float32),
        "w1": 0.2 * jax.random.normal(ks[4], (Cin, hidden, 1, 1), jnp.float32),
        "b1": 0.1 * jax.random.normal(ks[5], (Cin,), jnp.float32),
    }
    x = jax.random.normal(ks[6], (B, Cin, H, W), jnp.float32)

    out = dwconv_block(x, params)
    out = jax.block_until_ready(out)

    ref = jax.block_until_ready(_reference_forward(x, params))
    assert out.shape == (B, Cin, H, W)
    assert jnp.allclose(out, ref, rtol=1e-2, atol=1e-2), "mismatch vs reference"

    print("KERNEL_OK")
</pallas_src>

<mosaic_0001>
module attributes {stable_mosaic.version = 11 : i64} {
  func.func @_dwconv_block_kernel(%arg0: i32, %arg1: memref<1x4x256xf32, #tpu.memory_space<vmem>>, %arg2: memref<32x4xf32, #tpu.memory_space<vmem>>, %arg3: memref<32x1xf32, #tpu.memory_space<vmem>>, %arg4: memref<32x9xf32, #tpu.memory_space<vmem>>, %arg5: memref<32x1xf32, #tpu.memory_space<vmem>>, %arg6: memref<4x32xf32, #tpu.memory_space<vmem>>, %arg7: memref<4x1xf32, #tpu.memory_space<vmem>>, %arg8: memref<4x256xf32, #tpu.memory_space<vmem>>, %arg9: memref<1x4x256xf32, #tpu.memory_space<vmem>>) attributes {dimension_semantics = [#tpu.dimension_semantics<parallel>], iteration_bounds = array<i64: 2>, scalar_prefetch = 0 : i64, scratch_operands = 0 : i64, tpu.core_type = #tpu.core_type<tc>, window_params = [{transform_indices = @transform_0, window_bounds = array<i64: 1, 4, 256>}, {pipeline_mode = #tpu.pipeline_mode<synchronous>, transform_indices = @transform_1, window_bounds = array<i64: 32, 4>}, {pipeline_mode = #tpu.pipeline_mode<synchronous>, transform_indices = @transform_2, window_bounds = array<i64: 32, 1>}, {pipeline_mode = #tpu.pipeline_mode<synchronous>, transform_indices = @transform_3, window_bounds = array<i64: 32, 9>}, {pipeline_mode = #tpu.pipeline_mode<synchronous>, transform_indices = @transform_4, window_bounds = array<i64: 32, 1>}, {pipeline_mode = #tpu.pipeline_mode<synchronous>, transform_indices = @transform_5, window_bounds = array<i64: 4, 32>}, {pipeline_mode = #tpu.pipeline_mode<synchronous>, transform_indices = @transform_6, window_bounds = array<i64: 4, 1>}, {pipeline_mode = #tpu.pipeline_mode<synchronous>, transform_indices = @transform_7, window_bounds = array<i64: 4, 256>}, {transform_indices = @transform_8, window_bounds = array<i64: 1, 4, 256>}]} {
    %c0 = arith.constant 0 : index
    %c0_0 = arith.constant 0 : index
    %c0_1 = arith.constant 0 : index
    %0 = vector.load %arg1[%c0, %c0_0, %c0_1] : memref<1x4x256xf32, #tpu.memory_space<vmem>>, vector<1x4x256xf32>
    %1 = vector.shape_cast %0 : vector<1x4x256xf32> to vector<4x256xf32>
    %c0_2 = arith.constant 0 : index
    %c0_3 = arith.constant 0 : index
    %2 = vector.load %arg2[%c0_2, %c0_3] : memref<32x4xf32, #tpu.memory_space<vmem>>, vector<32x4xf32>
    %c0_4 = arith.constant 0 : index
    %c0_5 = arith.constant 0 : index
    %3 = vector.load %arg3[%c0_4, %c0_5] : memref<32x1xf32, #tpu.memory_space<vmem>>, vector<32x1xf32>
    %4 = vector.extract_strided_slice %2 {offsets = [0, 0], sizes = [32, 1], strides = [1, 1]} : vector<32x4xf32> to vector<32x1xf32>
    %5 = vector.extract_strided_slice %1 {offsets = [0, 0], sizes = [1, 256], strides = [1, 1]} : vector<4x256xf32> to vector<1x256xf32>
    %6 = vector.broadcast %4 : vector<32x1xf32> to vector<32x256xf32>
    %7 = vector.broadcast %5 : vector<1x256xf32> to vector<32x256xf32>
    %8 = arith.mulf %6, %7 : vector<32x256xf32>
    %9 = vector.extract_strided_slice %2 {offsets = [0, 1], sizes = [32, 1], strides = [1, 1]} : vector<32x4xf32> to vector<32x1xf32>
    %10 = vector.extract_strided_slice %1 {offsets = [1, 0], sizes = [1, 256], strides = [1, 1]} : vector<4x256xf32> to vector<1x256xf32>
    %11 = vector.broadcast %9 : vector<32x1xf32> to vector<32x256xf32>
    %12 = vector.broadcast %10 : vector<1x256xf32> to vector<32x256xf32>
    %13 = arith.mulf %11, %12 : vector<32x256xf32>
    %14 = arith.addf %8, %13 : vector<32x256xf32>
    %15 = vector.extract_strided_slice %2 {offsets = [0, 2], sizes = [32, 1], strides = [1, 1]} : vector<32x4xf32> to vector<32x1xf32>
    %16 = vector.extract_strided_slice %1 {offsets = [2, 0], sizes = [1, 256], strides = [1, 1]} : vector<4x256xf32> to vector<1x256xf32>
    %17 = vector.broadcast %15 : vector<32x1xf32> to vector<32x256xf32>
    %18 = vector.broadcast %16 : vector<1x256xf32> to vector<32x256xf32>
    %19 = arith.mulf %17, %18 : vector<32x256xf32>
    %20 = arith.addf %14, %19 : vector<32x256xf32>
    %21 = vector.extract_strided_slice %2 {offsets = [0, 3], sizes = [32, 1], strides = [1, 1]} : vector<32x4xf32> to vector<32x1xf32>
    %22 = vector.extract_strided_slice %1 {offsets = [3, 0], sizes = [1, 256], strides = [1, 1]} : vector<4x256xf32> to vector<1x256xf32>
    %23 = vector.broadcast %21 : vector<32x1xf32> to vector<32x256xf32>
    %24 = vector.broadcast %22 : vector<1x256xf32> to vector<32x256xf32>
    %25 = arith.mulf %23, %24 : vector<32x256xf32>
    %26 = arith.addf %20, %25 : vector<32x256xf32>
    %27 = vector.broadcast %3 : vector<32x1xf32> to vector<32x256xf32>
    %28 = arith.addf %26, %27 : vector<32x256xf32>
    %cst = arith.constant dense<0.000000e+00> : vector<32xf32>
    %29 = vector.multi_reduction <add>, %28, %cst [1] : vector<32x256xf32> to vector<32xf32>
    %30 = vector.shape_cast %29 : vector<32xf32> to vector<32x1xf32>
    %cst_6 = arith.constant 2.560000e+02 : f32
    %31 = vector.broadcast %cst_6 : f32 to vector<32x1xf32>
    %32 = arith.divf %30, %31 : vector<32x1xf32>
    %33 = arith.mulf %28, %28 : vector<32x256xf32>
    %cst_7 = arith.constant dense<0.000000e+00> : vector<32xf32>
    %34 = vector.multi_reduction <add>, %33, %cst_7 [1] : vector<32x256xf32> to vector<32xf32>
    %35 = vector.shape_cast %34 : vector<32xf32> to vector<32x1xf32>
    %cst_8 = arith.constant 2.560000e+02 : f32
    %36 = vector.broadcast %cst_8 : f32 to vector<32x1xf32>
    %37 = arith.divf %35, %36 : vector<32x1xf32>
    %38 = arith.mulf %32, %32 : vector<32x1xf32>
    %39 = arith.subf %37, %38 : vector<32x1xf32>
    %40 = vector.broadcast %32 : vector<32x1xf32> to vector<32x256xf32>
    %41 = arith.subf %28, %40 : vector<32x256xf32>
    %cst_9 = arith.constant 9.99999997E-7 : f32
    %42 = vector.broadcast %cst_9 : f32 to vector<32x1xf32>
    %43 = arith.addf %39, %42 : vector<32x1xf32>
    %44 = math.rsqrt %43 : vector<32x1xf32>
    %45 = vector.broadcast %44 : vector<32x1xf32> to vector<32x256xf32>
    %46 = arith.mulf %41, %45 : vector<32x256xf32>
    %47 = arith.negf %46 : vector<32x256xf32>
    %48 = math.exp %47 : vector<32x256xf32>
    %cst_10 = arith.constant 1.000000e+00 : f32
    %49 = vector.broadcast %cst_10 : f32 to vector<32x256xf32>
    %50 = arith.addf %49, %48 : vector<32x256xf32>
    %51 = arith.divf %49, %50 : vector<32x256xf32>
    %52 = arith.mulf %46, %51 : vector<32x256xf32>
    %c0_11 = arith.constant 0 : index
    %c0_12 = arith.constant 0 : index
    %53 = vector.load %arg8[%c0_11, %c0_12] : memref<4x256xf32, #tpu.memory_space<vmem>>, vector<4x256xf32>
    %54 = vector.extract_strided_slice %53 {offsets = [0, 0], sizes = [1, 256], strides = [1, 1]} : vector<4x256xf32> to vector<1x256xf32>
    %55 = vector.extract_strided_slice %53 {offsets = [1, 0], sizes = [1, 256], strides = [1, 1]} : vector<4x256xf32> to vector<1x256xf32>
    %56 = vector.extract_strided_slice %53 {offsets = [2, 0], sizes = [1, 256], strides = [1, 1]} : vector<4x256xf32> to vector<1x256xf32>
    %57 = vector.extract_strided_slice %53 {offsets = [3, 0], sizes = [1, 256], strides = [1, 1]} : vector<4x256xf32> to vector<1x256xf32>
    %c0_13 = arith.constant 0 : index
    %c0_14 = arith.constant 0 : index
    %58 = vector.load %arg4[%c0_13, %c0_14] : memref<32x9xf32, #tpu.memory_space<vmem>>, vector<32x9xf32>
    %59 = vector.extract_strided_slice %58 {offsets = [0, 4], sizes = [32, 1], strides = [1, 1]} : vector<32x9xf32> to vector<32x1xf32>
    %60 = vector.broadcast %59 : vector<32x1xf32> to vector<32x256xf32>
    %61 = arith.mulf %60, %52 : vector<32x256xf32>
    %c0_15 = arith.constant 0 : index
    %c0_16 = arith.constant 0 : index
    %62 = vector.load %arg5[%c0_15, %c0_16] : memref<32x1xf32, #tpu.memory_space<vmem>>, vector<32x1xf32>
    %63 = vector.broadcast %62 : vector<32x1xf32> to vector<32x256xf32>
    %64 = arith.addf %61, %63 : vector<32x256xf32>
    %c17_i32 = arith.constant 17 : i32
    %65 = tpu.dynamic_rotate %52 by %c17_i32 dim 1 : vector<32x256xf32>, i32 -> vector<32x256xf32>
    %66 = arith.mulf %54, %56 : vector<1x256xf32>
    %67 = vector.extract_strided_slice %58 {offsets = [0, 0], sizes = [32, 1], strides = [1, 1]} : vector<32x9xf32> to vector<32x1xf32>
    %68 = vector.broadcast %66 : vector<1x256xf32> to vector<32x256xf32>
    %69 = arith.mulf %65, %68 : vector<32x256xf32>
    %70 = vector.broadcast %67 : vector<32x1xf32> to vector<32x256xf32>
    %71 = arith.mulf %70, %69 : vector<32x256xf32>
    %72 = arith.addf %64, %71 : vector<32x256xf32>
    %c16_i32 = arith.constant 16 : i32
    %73 = tpu.dynamic_rotate %52 by %c16_i32 dim 1 : vector<32x256xf32>, i32 -> vector<32x256xf32>
    %74 = vector.extract_strided_slice %58 {offsets = [0, 1], sizes = [32, 1], strides = [1, 1]} : vector<32x9xf32> to vector<32x1xf32>
    %75 = vector.broadcast %54 : vector<1x256xf32> to vector<32x256xf32>
    %76 = arith.mulf %73, %75 : vector<32x256xf32>
    %77 = vector.broadcast %74 : vector<32x1xf32> to vector<32x256xf32>
    %78 = arith.mulf %77, %76 : vector<32x256xf32>
    %79 = arith.addf %72, %78 : vector<32x256xf32>
    %c15_i32 = arith.constant 15 : i32
    %80 = tpu.dynamic_rotate %52 by %c15_i32 dim 1 : vector<32x256xf32>, i32 -> vector<32x256xf32>
    %81 = arith.mulf %54, %57 : vector<1x256xf32>
    %82 = vector.extract_strided_slice %58 {offsets = [0, 2], sizes = [32, 1], strides = [1, 1]} : vector<32x9xf32> to vector<32x1xf32>
    %83 = vector.broadcast %81 : vector<1x256xf32> to vector<32x256xf32>
    %84 = arith.mulf %80, %83 : vector<32x256xf32>
    %85 = vector.broadcast %82 : vector<32x1xf32> to vector<32x256xf32>
    %86 = arith.mulf %85, %84 : vector<32x256xf32>
    %87 = arith.addf %79, %86 : vector<32x256xf32>
    %c1_i32 = arith.constant 1 : i32
    %88 = tpu.dynamic_rotate %52 by %c1_i32 dim 1 : vector<32x256xf32>, i32 -> vector<32x256xf32>
    %89 = vector.extract_strided_slice %58 {offsets = [0, 3], sizes = [32, 1], strides = [1, 1]} : vector<32x9xf32> to vector<32x1xf32>
    %90 = vector.broadcast %56 : vector<1x256xf32> to vector<32x256xf32>
    %91 = arith.mulf %88, %90 : vector<32x256xf32>
    %92 = vector.broadcast %89 : vector<32x1xf32> to vector<32x256xf32>
    %93 = arith.mulf %92, %91 : vector<32x256xf32>
    %94 = arith.addf %87, %93 : vector<32x256xf32>
    %c255_i32 = arith.constant 255 : i32
    %95 = tpu.dynamic_rotate %52 by %c255_i32 dim 1 : vector<32x256xf32>, i32 -> vector<32x256xf32>
    %96 = vector.extract_strided_slice %58 {offsets = [0, 5], sizes = [32, 1], strides = [1, 1]} : vector<32x9xf32> to vector<32x1xf32>
    %97 = vector.broadcast %57 : vector<1x256xf32> to vector<32x256xf32>
    %98 = arith.mulf %95, %97 : vector<32x256xf32>
    %99 = vector.broadcast %96 : vector<32x1xf32> to vector<32x256xf32>
    %100 = arith.mulf %99, %98 : vector<32x256xf32>
    %101 = arith.addf %94, %100 : vector<32x256xf32>
    %c241_i32 = arith.constant 241 : i32
    %102 = tpu.dynamic_rotate %52 by %c241_i32 dim 1 : vector<32x256xf32>, i32 -> vector<32x256xf32>
    %103 = arith.mulf %55, %56 : vector<1x256xf32>
    %104 = vector.extract_strided_slice %58 {offsets = [0, 6], sizes = [32, 1], strides = [1, 1]} : vector<32x9xf32> to vector<32x1xf32>
    %105 = vector.broadcast %103 : vector<1x256xf32> to vector<32x256xf32>
    %106 = arith.mulf %102, %105 : vector<32x256xf32>
    %107 = vector.broadcast %104 : vector<32x1xf32> to vector<32x256xf32>
    %108 = arith.mulf %107, %106 : vector<32x256xf32>
    %109 = arith.addf %101, %108 : vector<32x256xf32>
    %c240_i32 = arith.constant 240 : i32
    %110 = tpu.dynamic_rotate %52 by %c240_i32 dim 1 : vector<32x256xf32>, i32 -> vector<32x256xf32>
    %111 = vector.extract_strided_slice %58 {offsets = [0, 7], sizes = [32, 1], strides = [1, 1]} : vector<32x9xf32> to vector<32x1xf32>
    %112 = vector.broadcast %55 : vector<1x256xf32> to vector<32x256xf32>
    %113 = arith.mulf %110, %112 : vector<32x256xf32>
    %114 = vector.broadcast %111 : vector<32x1xf32> to vector<32x256xf32>
    %115 = arith.mulf %114, %113 : vector<32x256xf32>
    %116 = arith.addf %109, %115 : vector<32x256xf32>
    %c239_i32 = arith.constant 239 : i32
    %117 = tpu.dynamic_rotate %52 by %c239_i32 dim 1 : vector<32x256xf32>, i32 -> vector<32x256xf32>
    %118 = arith.mulf %55, %57 : vector<1x256xf32>
    %119 = vector.extract_strided_slice %58 {offsets = [0, 8], sizes = [32, 1], strides = [1, 1]} : vector<32x9xf32> to vector<32x1xf32>
    %120 = vector.broadcast %118 : vector<1x256xf32> to vector<32x256xf32>
    %121 = arith.mulf %117, %120 : vector<32x256xf32>
    %122 = vector.broadcast %119 : vector<32x1xf32> to vector<32x256xf32>
    %123 = arith.mulf %122, %121 : vector<32x256xf32>
    %124 = arith.addf %116, %123 : vector<32x256xf32>
    %cst_17 = arith.constant dense<0.000000e+00> : vector<32xf32>
    %125 = vector.multi_reduction <add>, %124, %cst_17 [1] : vector<32x256xf32> to vector<32xf32>
    %126 = vector.shape_cast %125 : vector<32xf32> to vector<32x1xf32>
    %cst_18 = arith.constant 2.560000e+02 : f32
    %127 = vector.broadcast %cst_18 : f32 to vector<32x1xf32>
    %128 = arith.divf %126, %127 : vector<32x1xf32>
    %129 = arith.mulf %124, %124 : vector<32x256xf32>
    %cst_19 = arith.constant dense<0.000000e+00> : vector<32xf32>
    %130 = vector.multi_reduction <add>, %129, %cst_19 [1] : vector<32x256xf32> to vector<32xf32>
    %131 = vector.shape_cast %130 : vector<32xf32> to vector<32x1xf32>
    %cst_20 = arith.constant 2.560000e+02 : f32
    %132 = vector.broadcast %cst_20 : f32 to vector<32x1xf32>
    %133 = arith.divf %131, %132 : vector<32x1xf32>
    %134 = arith.mulf %128, %128 : vector<32x1xf32>
    %135 = arith.subf %133, %134 : vector<32x1xf32>
    %136 = vector.broadcast %128 : vector<32x1xf32> to vector<32x256xf32>
    %137 = arith.subf %124, %136 : vector<32x256xf32>
    %cst_21 = arith.constant 9.99999997E-7 : f32
    %138 = vector.broadcast %cst_21 : f32 to vector<32x1xf32>
    %139 = arith.addf %135, %138 : vector<32x1xf32>
    %140 = math.rsqrt %139 : vector<32x1xf32>
    %141 = vector.broadcast %140 : vector<32x1xf32> to vector<32x256xf32>
    %142 = arith.mulf %137, %141 : vector<32x256xf32>
    %143 = arith.addf %52, %142 : vector<32x256xf32>
    %144 = arith.negf %143 : vector<32x256xf32>
    %145 = math.exp %144 : vector<32x256xf32>
    %cst_22 = arith.constant 1.000000e+00 : f32
    %146 = vector.broadcast %cst_22 : f32 to vector<32x256xf32>
    %147 = arith.addf %146, %145 : vector<32x256xf32>
    %148 = arith.divf %146, %147 : vector<32x256xf32>
    %149 = arith.mulf %143, %148 : vector<32x256xf32>
    %c0_23 = arith.constant 0 : index
    %c0_24 = arith.constant 0 : index
    %150 = vector.load %arg6[%c0_23, %c0_24] : memref<4x32xf32, #tpu.memory_space<vmem>>, vector<4x32xf32>
    %c0_25 = arith.constant 0 : index
    %c0_26 = arith.constant 0 : index
    %151 = vector.load %arg7[%c0_25, %c0_26] : memref<4x1xf32, #tpu.memory_space<vmem>>, vector<4x1xf32>
    %cst_27 = arith.constant dense<0.000000e+00> : vector<4x256xf32>
    %152 = tpu.matmul %150, %149, %cst_27 {dimension_numbers = #tpu.dot_dimension_numbers<[1], [0], [0], [1], [0, 0, 1, 1], [], []>} : vector<4x32xf32>, vector<32x256xf32>, vector<4x256xf32> -> vector<4x256xf32>
    %153 = vector.broadcast %151 : vector<4x1xf32> to vector<4x256xf32>
    %154 = arith.addf %152, %153 : vector<4x256xf32>
    %cst_28 = arith.constant dense<0.000000e+00> : vector<4xf32>
    %155 = vector.multi_reduction <add>, %154, %cst_28 [1] : vector<4x256xf32> to vector<4xf32>
    %156 = vector.shape_cast %155 : vector<4xf32> to vector<4x1xf32>
    %cst_29 = arith.constant 2.560000e+02 : f32
    %157 = vector.broadcast %cst_29 : f32 to vector<4x1xf32>
    %158 = arith.divf %156, %157 : vector<4x1xf32>
    %159 = arith.mulf %154, %154 : vector<4x256xf32>
    %cst_30 = arith.constant dense<0.000000e+00> : vector<4xf32>
    %160 = vector.multi_reduction <add>, %159, %cst_30 [1] : vector<4x256xf32> to vector<4xf32>
    %161 = vector.shape_cast %160 : vector<4xf32> to vector<4x1xf32>
    %cst_31 = arith.constant 2.560000e+02 : f32
    %162 = vector.broadcast %cst_31 : f32 to vector<4x1xf32>
    %163 = arith.divf %161, %162 : vector<4x1xf32>
    %164 = arith.mulf %158, %158 : vector<4x1xf32>
    %165 = arith.subf %163, %164 : vector<4x1xf32>
    %166 = vector.broadcast %158 : vector<4x1xf32> to vector<4x256xf32>
    %167 = arith.subf %154, %166 : vector<4x256xf32>
    %cst_32 = arith.constant 9.99999997E-7 : f32
    %168 = vector.broadcast %cst_32 : f32 to vector<4x1xf32>
    %169 = arith.addf %165, %168 : vector<4x1xf32>
    %170 = math.rsqrt %169 : vector<4x1xf32>
    %171 = vector.broadcast %170 : vector<4x1xf32> to vector<4x256xf32>
    %172 = arith.mulf %167, %171 : vector<4x256xf32>
    %173 = arith.addf %1, %172 : vector<4x256xf32>
    %174 = arith.negf %173 : vector<4x256xf32>
    %175 = math.exp %174 : vector<4x256xf32>
    %cst_33 = arith.constant 1.000000e+00 : f32
    %176 = vector.broadcast %cst_33 : f32 to vector<4x256xf32>
    %177 = arith.addf %176, %175 : vector<4x256xf32>
    %178 = arith.divf %176, %177 : vector<4x256xf32>
    %179 = arith.mulf %173, %178 : vector<4x256xf32>
    %c0_34 = arith.constant 0 : index
    %c0_35 = arith.constant 0 : index
    %c0_36 = arith.constant 0 : index
    %180 = vector.load %arg9[%c0_34, %c0_35, %c0_36] : memref<1x4x256xf32, #tpu.memory_space<vmem>>, vector<1x4x256xf32>
    %181 = vector.shape_cast %180 : vector<1x4x256xf32> to vector<4x256xf32>
    %182 = vector.shape_cast %179 : vector<4x256xf32> to vector<1x4x256xf32>
    tpu.vector_store %arg9[%c0_34, %c0_35, %c0_36], %182 {strides = array<i32>} : memref<1x4x256xf32, #tpu.memory_space<vmem>>, vector<1x4x256xf32>,
    return
  }
  func.func @transform_0(%arg0: i32) -> (i32, i32, i32) {
    %c0_i32 = arith.constant 0 : i32
    %c0_i32_0 = arith.constant 0 : i32
    %c0_i32_1 = arith.constant 0 : i32
    return %arg0, %c0_i32, %c0_i32_0 : i32, i32, i32
  }
  func.func @transform_1(%arg0: i32) -> (i32, i32) {
    %c0_i32 = arith.constant 0 : i32
    %c0_i32_0 = arith.constant 0 : i32
    %c0_i32_1 = arith.constant 0 : i32
    return %c0_i32, %c0_i32_0 : i32, i32
  }
  func.func @transform_2(%arg0: i32) -> (i32, i32) {
    %c0_i32 = arith.constant 0 : i32
    %c0_i32_0 = arith.constant 0 : i32
    %c0_i32_1 = arith.constant 0 : i32
    return %c0_i32, %c0_i32_0 : i32, i32
  }
  func.func @transform_3(%arg0: i32) -> (i32, i32) {
    %c0_i32 = arith.constant 0 : i32
    %c0_i32_0 = arith.constant 0 : i32
    %c0_i32_1 = arith.constant 0 : i32
    return %c0_i32, %c0_i32_0 : i32, i32
  }
  func.func @transform_4(%arg0: i32) -> (i32, i32) {
    %c0_i32 = arith.constant 0 : i32
    %c0_i32_0 = arith.constant 0 : i32
    %c0_i32_1 = arith.constant 0 : i32
    return %c0_i32, %c0_i32_0 : i32, i32
  }
  func.func @transform_5(%arg0: i32) -> (i32, i32) {
    %c0_i32 = arith.constant 0 : i32
    %c0_i32_0 = arith.constant 0 : i32
    %c0_i32_1 = arith.constant 0 : i32
    return %c0_i32, %c0_i32_0 : i32, i32
  }
  func.func @transform_6(%arg0: i32) -> (i32, i32) {
    %c0_i32 = arith.constant 0 : i32
    %c0_i32_0 = arith.constant 0 : i32
    %c0_i32_1 = arith.constant 0 : i32
    return %c0_i32, %c0_i32_0 : i32, i32
  }
  func.func @transform_7(%arg0: i32) -> (i32, i32) {
    %c0_i32 = arith.constant 0 : i32
    %c0_i32_0 = arith.constant 0 : i32
    %c0_i32_1 = arith.constant 0 : i32
    return %c0_i32, %c0_i32_0 : i32, i32
  }
  func.func @transform_8(%arg0: i32) -> (i32, i32, i32) {
    %c0_i32 = arith.constant 0 : i32
    %c0_i32_0 = arith.constant 0 : i32
    %c0_i32_1 = arith.constant 0 : i32
    return %arg0, %c0_i32, %c0_i32_0 : i32, i32, i32
  }
}

</mosaic_0001>

<bundles_post_ra>
// kernel: tpu_custom_call.1
= control target key start
LH: loop header
LB: loop body
LE: loop exit
PB: predicated region body
PF: predicated region fallthrough
CT: control target
= control target key end

     0   :  { %13 = vsyncpa [#allocation3], 0  ;;  %s3183_s0 = inlined_call_operand.vmem [shape: f32[2,4,256], index: 0, kind: input, shape index: {}]   ;;  %s3184_s1 = inlined_call_operand.vmem [shape: f32[32,4], index: 1, kind: input, shape index: {}]   ;;  %s3185_s2 = inlined_call_operand.vmem [shape: f32[32,1], index: 2, kind: input, shape index: {}]   ;;  %s3186_s3 = inlined_call_operand.vmem [shape: f32[32,9], index: 3, kind: input, shape index: {}]   ;;  %s3187_s4 = inlined_call_operand.vmem [shape: f32[32,1], index: 4, kind: input, shape index: {}]   ;;  %s3188_s5 = inlined_call_operand.vmem [shape: f32[4,32], index: 5, kind: input, shape index: {}]   ;;  %s3189_s6 = inlined_call_operand.vmem [shape: f32[4,1], index: 6, kind: input, shape index: {}]   ;;  %s3190_s7 = inlined_call_operand.vmem [shape: f32[4,256], index: 7, kind: input, shape index: {}]   ;;  %s3191_s8 = inlined_call_operand.hbm [shape: f32[2,4,256], index: 8, kind: output, shape index: {}]  }
   0x1   :  { %15 = vsyncpa [#allocation3 + $0x1], 0  ;;  %s2096_s27 = smov 0   ;;  %s2098_s28 = smov 0  }
   0x2   :  { %s2100_s29 = smov 0   ;;  %s2102_s30 = smov 0  }
   0x3 LB: > { %s2117_s9 = sadd.s32 4294967295, %s2030_s30   ;;  %s1742_s10 = sadd.s32 4294967294, %s2030_s30   ;;  %s2030_s30 = sphi %s2102_s30, %s3251_s30   ;;  %s2026_s29 = sphi %s2100_s29, %s3250_s29   ;;  %s2022_s28 = sphi %s2098_s28, %s3249_s28   ;;  %s2018_s27 = sphi %s2096_s27, %s3248_s27  }
   0x4   : > { %s2121_s11 = sadd.s32 1, %s2030_s30   ;;  %s201_s12 = sadd.s32 1, %s2026_s29 }
   0x5   : > { %s198_s13 = ssub.s32 %s2030_s30, %s2121_s11  ;;  %p211_p0 = scmp.ne.s32.totalorder %s2026_s29, %s2022_s28 }
   0x6   : > { %p199_p1 = scmp.eq.s32.totalorder %s198_s13, 0  ;;  %p212_p2 = scmp.eq.s32.totalorder %s2117_s9, 1 }
   0x7   : > { %p217_p3 = scmp.ne.s32.totalorder %s2022_s28, %s2018_s27  ;;  %p218_p4 = scmp.eq.s32.totalorder %s1742_s10, 1 }
   0x8   : > { %s2132_s14 = scalar_select %p199_p1, %s2026_s29, %s201_s12  }
   0x9   : > { %p2134_p5 = por %p212_p2, %p211_p0  ;;  %p2138_p6 = por %p218_p4, %p217_p3 }
   0xa   : > { %p1745_p7 = scmp.ge.s32.totalorder %s2030_s30, 1  ;;  %p265_p8 = scmp.lt.s32.totalorder %s2030_s30, 3 }
   0xc   : > { %p266_p9 = pnand %p1745_p7, %p265_p8 }
   0xe   : > { %269 = sbr.rel (%p266_p9) target bundleno = 1325 (0x52d), region = 52 }
  0x15   : > { %v305_v0 = vld [vmem:[%s3184_s1] sm:$0xff]  ;;  %v2032_v1 = vmov 3   ;;  %v2033_v2 = vmov 1   ;;  %v306_v3 = vld [vmem:[%s3184_s1 + $0x8] sm:$0xff]  ;;  %v2034_v4 = vmov 2   ;;  %v308_v5 = vld [vmem:[%s3184_s1 + $0x18] sm:$0xff]  ;;  %v334_v20 = vlaneseq }
  0x16   : > { %1846 = vset.pattern.permute.xlu0 %v2032_v1  ;;  %1842 = vset.pattern.permute.xlu1 %v2033_v2  ;;  %v2160_v6 = vld [vmem:[%s3186_s3] sm:$0xff]  ;;  %v307_v7 = vld [vmem:[%s3184_s1 + $0x10] sm:$0xff]  ;;  %v2035_v8 = vmov 4   ;;  %v3194_v9 = vmov 0   ;;  %v312_v11 = vld [vmem:[%s3185_s2 + $0x18] sm:$0xff]  ;;  %p299_p10 = scmp.lt.s32.totalorder %s2117_s9, 1 }
  0x17   : > { %461 = vperm.xlu0 %1846, %v305_v0   ;;  %361 = vperm.xlu1 %1842, %v305_v0   ;;  %v309_v10 = vld [vmem:[%s3185_s2] sm:$0xff]  ;;  %v310_v12 = vld [vmem:[%s3185_s2 + $0x8] sm:$0xff]  ;;  %v311_v13 = vld [vmem:[%s3185_s2 + $0x10] sm:$0xff]  ;;  %v2221_v23 = vshrl.u32 %v334_v20, 7  ;;  %s2041_s12 = smov 17   ;;  %s2042_s13 = smov 16  }
  0x18   : > { %v2188_v14 = vld [vmem:[%s3186_s3 + $0x8] sm:$0xff]  ;;  %v700_v15 = vld [vmem:[%s3187_s4] sm:$0xff]  ;;  %v2203_v17 = vld [vmem:[%s3186_s3 + $0x10] sm:$0xff]  ;;  %s300_s21 = scalar_select %p299_p10, %s2117_s9, 1  ;;  %vm1557_vm8 = vcmask 261120   ;;  %vm1632_vm9 = vcmask 1043456  }
  0x19   : > { %v701_v16 = vld [vmem:[%s3187_s4 + $0x8] sm:$0xff]  ;;  %v2209_v18 = vld [vmem:[%s3186_s3 + $0x18] sm:$0xff]  ;;  %v702_v19 = vld [vmem:[%s3187_s4 + $0x10] sm:$0xff]  ;;  %v2229_v26 = vsub.s32 1, %v2221_v23  ;;  %v2232_v27 = vsub.s32 5, %v2221_v23  ;;  %v2240_v31 = vsub.s32 0, %v2221_v23 }
  0x1a   : > { %s1775_s22 = sshll.u32 %s300_s21, 3  ;;  %v2243_v32 = vsub.s32 4, %v2221_v23  ;;  %v2248_v35 = vsub.s32 2, %v2221_v23  ;;  %v3193_v36 = vsub.s32 6, %v2221_v23  ;;  %v2258_v41 = vsub.s32 3, %v2221_v23  ;;  %s2043_s17 = smov 15  }
  0x1b   : > { %1847 = vset.pattern.permute.xlu0 %v2034_v4  ;;  %365 = vperm.xlu1 %1842, %v306_v3   ;;  %s2226_s25 = scalar_lea.vmem %s3183_s0, %s1775_s22  ;;  %v3192_v42 = vsub.s32 7, %v2221_v23  ;;  %s2044_s18 = smov 1  }
  0x1c   : > { %411 = vperm.xlu0 %1847, %v305_v0   ;;  %v304_v28 = vld [vmem:[%s2226_s25] sm:$0xff]  ;;  %s2045_s19 = smov 127   ;;  %s2046_s20 = smov 113  }
  0x1d   : > { %v379_v33 = vrot.slane %v304_v28, %v2229_v26  ;;  %v383_v34 = vrot.slane %v304_v28, %v2232_v27  ;;  %v337_v38 = vrot.slane %v304_v28, %v2240_v31  ;;  %v341_v39 = vrot.slane %v304_v28, %v2243_v32  ;;  %s2047_s21 = smov 112   ;;  %s2048_s22 = smov 111  }
  0x1e   : > { %v429_v45 = vrot.slane %v304_v28, %v2248_v35  ;;  %v433_v46 = vrot.slane %v304_v28, %v3193_v36  ;;  %v479_v49 = vrot.slane %v304_v28, %v2258_v41  ;;  %v483_v50 = vrot.slane %v304_v28, %v3192_v42 }
  0x1f   : > { %1843 = vset.pattern.permute.xlu1 %v2034_v4  ;;  %v389_v43 = vrot.slane %v379_v33, %v2229_v26  ;;  %v393_v44 = vrot.slane %v383_v34, %v2229_v26  ;;  %v347_v47 = vrot.slane %v337_v38, %v2240_v31  ;;  %v2268_v48 = vrot.slane %v341_v39, %v2240_v31 }
  0x20   : > { %423 = vperm.xlu0 %1847, %v308_v5   ;;  %415 = vperm.xlu1 %1843, %v306_v3   ;;  %v439_v57 = vrot.slane %v429_v45, %v2248_v35  ;;  %v443_v58 = vrot.slane %v433_v46, %v2248_v35  ;;  %v489_v63 = vrot.slane %v479_v49, %v2258_v41 }
  0x24   : > { %1852 = vset.pattern.permute.xlu0 %v2035_v8  ;;  %1844 = vset.pattern.permute.xlu1 %v3194_v9 }
  0x25   : > { %674 = vperm.xlu0 %1852, %v2160_v6   ;;  %325 = vperm.xlu1 %1844, %v307_v7  }
  0x29   : > { %1853 = vset.pattern.permute.xlu0 %v3194_v9  ;;  %1845 = vset.pattern.permute.xlu1 %v2033_v2 }
  0x2a   : > { %315 = vperm.xlu0 %1853, %v305_v0   ;;  %369 = vperm.xlu1 %1845, %v307_v7   ;;  %v493_v0 = vrot.slane %v483_v50, %v2258_v41 }
  0x2e   : > { %320 = vperm.xlu0 %1853, %v306_v3   ;;  %373 = vperm.xlu1 %1845, %v308_v5  }
  0x32   : > { %330 = vperm.xlu0 %1853, %v308_v5   ;;  %1848 = vset.pattern.permute.xlu1 %v2032_v1 }
  0x33   : > { %465 = vperm.xlu1 %1848, %v306_v3  }
  0x36   : > { %512 = vperm.xlu0 %1853, %v309_v10  }
  0x37   : > { %1849 = vset.pattern.permute.xlu1 %v2034_v4 }
  0x38   : > { %419 = vperm.xlu1 %1849, %v307_v7  }
  0x3a   : > { %527 = vperm.xlu0 %1853, %v312_v11  }
  0x3c   : > { %1850 = vset.pattern.permute.xlu1 %v2032_v1 }
  0x3d   : > { %469 = vperm.xlu1 %1850, %v307_v7  }
  0x41   : > { %473 = vperm.xlu1 %1850, %v308_v5  }
  0x45   : > { %1851 = vset.pattern.permute.xlu1 %v3194_v9 }
  0x46   : > { %517 = vperm.xlu1 %1851, %v310_v12  }
  0x4a   : > { %522 = vperm.xlu1 %1851, %v311_v13  }
  0x4e   : > { %1854 = vset.pattern.permute.xlu1 %v2035_v8 }
  0x4f   : > { %679 = vperm.xlu1 %1854, %v2188_v14  }
  0x53   : > { %1855 = vset.pattern.permute.xlu1 %v3194_v9 }
  0x54   : > { %706 = vperm.xlu1 %1855, %v700_v15  }
  0x58   : > { %711 = vperm.xlu1 %1855, %v701_v16  }
  0x5c   : > { %792 = vperm.xlu1 %1855, %v2160_v6  }
  0x60   : > { %796 = vperm.xlu1 %1855, %v2188_v14  }
  0x64   : > { %1856 = vset.pattern.permute.xlu1 %v2035_v8 }
  0x65   : > { %684 = vperm.xlu1 %1856, %v2203_v17  }
  0x69   : > { %689 = vperm.xlu1 %1856, %v2209_v18  }
  0x6d   : > { %1857 = vset.pattern.permute.xlu1 %v2033_v2 }
  0x6e   : > { %875 = vperm.xlu1 %1857, %v2160_v6  }
  0x72   : > { %1858 = vset.pattern.permute.xlu1 %v3194_v9 }
  0x73   : > { %716 = vperm.xlu1 %1858, %v702_v19  }
  0x96   : > { %v362_v21 = vpop.permute.xlu1 %361  ;;  %v462_v22 = vpop.permute.xlu0 %461 }
  0x97   : > { %v394_v53 = vmul.f32 %v389_v43, %v362_v21  ;;  %v395_v54 = vmul.f32 %v393_v44, %v362_v21  ;;  %v494_v11 = vmul.f32 %v489_v63, %v462_v22  ;;  %v495_v12 = vmul.f32 %v493_v0, %v462_v22 }
  0x9a   : > { %v366_v24 = vpop.permute.xlu1 %365 }
  0x9b   : > { %v412_v25 = vpop.permute.xlu0 %411  ;;  %v396_v45 = vmul.f32 %v389_v43, %v366_v24  ;;  %v397_v22 = vmul.f32 %v393_v44, %v366_v24 }
  0x9c   : > { %v444_v3 = vmul.f32 %v439_v57, %v412_v25  ;;  %v445_v5 = vmul.f32 %v443_v58, %v412_v25 }
  0x9f   : > { %v2235_v29 = vpop.permute.xlu1 %415  ;;  %v2237_v30 = vpop.permute.xlu0 %423 }
  0xa4   : > { %v2251_v37 = vpop.permute.xlu1 %325  ;;  %v2255_v40 = vpop.permute.xlu0 %674 }
  0xa9   : > { %v316_v51 = vpop.permute.xlu0 %315  ;;  %v370_v52 = vpop.permute.xlu1 %369 }
  0xaa   : > { %v352_v55 = vmul.f32 %v347_v47, %v316_v51  ;;  %v353_v56 = vmul.f32 %v2268_v48, %v316_v51  ;;  %v399_v24 = vmul.f32 %v393_v44, %v370_v52 }
  0xac   : > { %v402_v59 = vadd.f32 %v394_v53, %v352_v55  ;;  %v403_v60 = vadd.f32 %v395_v54, %v353_v56  ;;  %v446_v56 = vmul.f32 %v439_v57, %v2235_v29 }
  0xad   : > { %v321_v61 = vpop.permute.xlu0 %320  ;;  %v374_v62 = vpop.permute.xlu1 %373 }
  0xae   : > { %v452_v7 = vadd.f32 %v444_v3, %v402_v59  ;;  %v453_v8 = vadd.f32 %v445_v5, %v403_v60  ;;  %v354_v33 = vmul.f32 %v347_v47, %v321_v61  ;;  %v355_v38 = vmul.f32 %v2268_v48, %v321_v61 }
  0xaf   : > { %v400_v49 = vmul.f32 %v389_v43, %v374_v62  ;;  %v401_v51 = vmul.f32 %v393_v44, %v374_v62  ;;  %v447_v60 = vmul.f32 %v443_v58, %v2235_v29  ;;  %v450_v61 = vmul.f32 %v439_v57, %v2237_v30 }
  0xb0   : > { %v502_v15 = vadd.f32 %v494_v11, %v452_v7  ;;  %v503_v16 = vadd.f32 %v495_v12, %v453_v8  ;;  %v404_v50 = vadd.f32 %v396_v45, %v354_v33  ;;  %v405_v53 = vadd.f32 %v397_v22, %v355_v38 }
  0xb1   : > { %v331_v10 = vpop.permute.xlu0 %330  ;;  %v451_v3 = vmul.f32 %v443_v58, %v2237_v30  ;;  %v356_v5 = vmul.f32 %v347_v47, %v2251_v37  ;;  %v398_v7 = vmul.f32 %v389_v43, %v370_v52  ;;  %v357_v29 = vmul.f32 %v2268_v48, %v2251_v37 }
  0xb2   : > { %v466_v13 = vpop.permute.xlu1 %465  ;;  %v358_v39 = vmul.f32 %v347_v47, %v331_v10  ;;  %v359_v46 = vmul.f32 %v2268_v48, %v331_v10  ;;  %v454_v8 = vadd.f32 %v446_v56, %v404_v50 }
  0xb3   : > { %v496_v10 = vmul.f32 %v489_v63, %v466_v13  ;;  %v497_v11 = vmul.f32 %v493_v0, %v466_v13  ;;  %v407_v43 = vadd.f32 %v399_v24, %v357_v29 }
  0xb4   : > { %v408_v54 = vadd.f32 %v400_v49, %v358_v39  ;;  %v409_v59 = vadd.f32 %v401_v51, %v359_v46 }
  0xb5   : > { %v513_v19 = vpop.permute.xlu0 %512  ;;  %v504_v46 = vadd.f32 %v496_v10, %v454_v8 }
  0xb6   : > { %v2278_v21 = vadd.f32 %v513_v19, %v502_v15  ;;  %v2280_v28 = vadd.f32 %v513_v19, %v503_v16  ;;  %v458_v12 = vadd.f32 %v450_v61, %v408_v54  ;;  %v455_v15 = vadd.f32 %v447_v60, %v405_v53 }
  0xb7   : > { %v420_v34 = vpop.permute.xlu1 %419  ;;  %v459_v19 = vadd.f32 %v451_v3, %v409_v59 }
  0xb8   : > { %v538_v25 = vadd.f32 %v2280_v28, %v2278_v21  ;;  %v448_v16 = vmul.f32 %v439_v57, %v420_v34  ;;  %v449_v39 = vmul.f32 %v443_v58, %v420_v34  ;;  %v505_v13 = vadd.f32 %v497_v11, %v455_v15  ;;  %v703_v15 = vld [vmem:[%s3187_s4 + $0x18] sm:$0xff] }
  0xb9   : > { %v528_v44 = vpop.permute.xlu0 %527  ;;  %v556_v24 = vmul.f32 %v2280_v28, %v2280_v28 }
  0xba   : > { %539 = vadd.xlane.f32.xlu1 %v538_v25  ;;  %v406_v25 = vadd.f32 %v398_v7, %v356_v5  ;;  %v457_v51 = vadd.f32 %v449_v39, %v407_v43  ;;  %v555_v7 = vmul.f32 %v2278_v21, %v2278_v21 }
  0xbc   : > { %v470_v55 = vpop.permute.xlu1 %469  ;;  %v456_v22 = vadd.f32 %v448_v16, %v406_v25  ;;  %v563_v10 = vadd.f32 %v556_v24, %v555_v7  ;;  %v2039_v16 = vmov 7  }
  0xbd   : > { %v498_v30 = vmul.f32 %v489_v63, %v470_v55  ;;  %v499_v52 = vmul.f32 %v493_v0, %v470_v55 }
  0xbf   : > { %v506_v48 = vadd.f32 %v498_v30, %v456_v22 }
  0xc0   : > { %v474_v62 = vpop.permute.xlu1 %473 }
  0xc1   : > { %v500_v33 = vmul.f32 %v489_v63, %v474_v62  ;;  %v501_v38 = vmul.f32 %v493_v0, %v474_v62  ;;  %v507_v63 = vadd.f32 %v499_v52, %v457_v51 }
  0xc3   : > { %v508_v45 = vadd.f32 %v500_v33, %v458_v12  ;;  %v509_v47 = vadd.f32 %v501_v38, %v459_v19 }
  0xc5   : > { %v518_v49 = vpop.permute.xlu1 %517  ;;  %v2293_v50 = vadd.f32 %v528_v44, %v508_v45  ;;  %v2295_v57 = vadd.f32 %v528_v44, %v509_v47 }
  0xc6   : > { %v2297_v53 = vadd.f32 %v518_v49, %v504_v46  ;;  %v2299_v37 = vadd.f32 %v518_v49, %v505_v13 }
  0xc7   : > { %v547_v58 = vadd.f32 %v2295_v57, %v2293_v50  ;;  %v561_v61 = vmul.f32 %v2293_v50, %v2293_v50  ;;  %v562_v3 = vmul.f32 %v2295_v57, %v2295_v57 }
  0xc8   : > { %v541_v0 = vadd.f32 %v2299_v37, %v2297_v53  ;;  %v557_v34 = vmul.f32 %v2297_v53, %v2297_v53  ;;  %v558_v54 = vmul.f32 %v2299_v37, %v2299_v37 }
  0xc9   : > { %v523_v55 = vpop.permute.xlu1 %522  ;;  %548 = vadd.xlane.f32.xlu1 %v547_v58  ;;  %v572_v8 = vadd.f32 %v562_v3, %v561_v61 }
  0xca   : > { %v2309_v56 = vadd.f32 %v523_v55, %v506_v48  ;;  %v2311_v59 = vadd.f32 %v523_v55, %v507_v63  ;;  %542 = vadd.xlane.f32.xlu0 %v541_v0  ;;  %v566_v60 = vadd.f32 %v558_v54, %v557_v34 }
  0xcc   : > { %v544_v5 = vadd.f32 %v2311_v59, %v2309_v56  ;;  %v559_v11 = vmul.f32 %v2309_v56, %v2309_v56  ;;  %v560_v62 = vmul.f32 %v2311_v59, %v2311_v59 }
  0xcd   : > { %567 = vadd.xlane.f32.xlu1 %v566_v60 }
  0xce   : > { %545 = vadd.xlane.f32.xlu0 %v544_v5  ;;  %v569_v12 = vadd.f32 %v560_v62, %v559_v11  ;;  %v2362_v19 = vpop.permute.xlu1 %679 }
  0xd1   : > { %573 = vadd.xlane.f32.xlu1 %v572_v8 }
  0xd2   : > { %564 = vadd.xlane.f32.xlu0 %v563_v10 }
  0xd3   : > { %v2367_v33 = vpop.permute.xlu1 %706 }
  0xd6   : > { %570 = vadd.xlane.f32.xlu0 %v569_v12 }
  0xd7   : > { %v2369_v38 = vpop.permute.xlu1 %711 }
  0xdb   : > { %v2371_v29 = vpop.permute.xlu1 %792 }
  0xe2   : > { %721 = vperm.xlu1 %1858, %v703_v15  }
  0xe6   : > { %804 = vperm.xlu1 %1858, %v2209_v18  }
  0xea   : > { %1860 = vset.pattern.permute.xlu1 %v2034_v4 }
  0xeb   : > { %963 = vperm.xlu1 %1860, %v2160_v6  }
  0xec   : > { %800 = vperm.xlu0 %1853, %v2203_v17  }
  0xef   : > { %1862 = vset.pattern.permute.xlu1 %v2033_v2 }
  0xf0   : > { %1859 = vset.pattern.permute.xlu0 %v2033_v2  ;;  %887 = vperm.xlu1 %1862, %v2209_v18   ;;  %v2037_v2 = vmov 5  }
  0xf1   : > { %879 = vperm.xlu0 %1859, %v2188_v14  }
  0xf4   : > { %1863 = vset.pattern.permute.xlu1 %v2032_v1 }
  0xf5   : > { %883 = vperm.xlu0 %1859, %v2203_v17   ;;  %1046 = vperm.xlu1 %1863, %v2160_v6  }
  0xf9   : > { %1861 = vset.pattern.permute.xlu0 %v2034_v4  ;;  %1865 = vset.pattern.permute.xlu1 %v2034_v4  ;;  %v2038_v4 = vmov 6  }
  0xfa   : > { %967 = vperm.xlu0 %1861, %v2188_v14   ;;  %975 = vperm.xlu1 %1865, %v2209_v18  }
  0xfe   : > { %971 = vperm.xlu0 %1861, %v2203_v17   ;;  %1866 = vset.pattern.permute.xlu1 %v2037_v2 }
  0xff   : > { %1129 = vperm.xlu1 %1866, %v2160_v6  }
 0x102   : > { %1864 = vset.pattern.permute.xlu0 %v2032_v1 }
 0x103   : > { %1050 = vperm.xlu0 %1864, %v2188_v14   ;;  %1868 = vset.pattern.permute.xlu1 %v2032_v1  ;;  %v2040_v1 = vmov 8  }
 0x104   : > { %1058 = vperm.xlu1 %1868, %v2209_v18  }
 0x107   : > { %1054 = vperm.xlu0 %1864, %v2203_v17  }
 0x108   : > { %1869 = vset.pattern.permute.xlu1 %v2038_v4 }
 0x109   : > { %1217 = vperm.xlu1 %1869, %v2160_v6  }
 0x10b   : > { %1867 = vset.pattern.permute.xlu0 %v2037_v2 }
 0x10c   : > { %1133 = vperm.xlu0 %1867, %v2188_v14  }
 0x10d   : > { %1871 = vset.pattern.permute.xlu1 %v2037_v2 }
 0x10e   : > { %1141 = vperm.xlu1 %1871, %v2209_v18  }
 0x110   : > { %1137 = vperm.xlu0 %1867, %v2203_v17  }
 0x112   : > { %1872 = vset.pattern.permute.xlu1 %v2039_v16 }
 0x113   : > { %1300 = vperm.xlu1 %1872, %v2160_v6  }
 0x114   : > { %1870 = vset.pattern.permute.xlu0 %v2038_v4 }
 0x115   : > { %1221 = vperm.xlu0 %1870, %v2188_v14  }
 0x117   : > { %1874 = vset.pattern.permute.xlu1 %v2038_v4 }
 0x118   : > { %1229 = vperm.xlu1 %1874, %v2209_v18  }
 0x119   : > { %1225 = vperm.xlu0 %1870, %v2203_v17  }
 0x11c   : > { %1875 = vset.pattern.permute.xlu1 %v2040_v1 }
 0x11d   : > { %1873 = vset.pattern.permute.xlu0 %v2039_v16  ;;  %1383 = vperm.xlu1 %1875, %v2160_v6   ;;  %v2373_v6 = vpop.permute.xlu1 %796 }
 0x11e   : > { %1304 = vperm.xlu0 %1873, %v2188_v14  }
 0x121   : > { %1877 = vset.pattern.permute.xlu1 %v2039_v16  ;;  %v2375_v39 = vpop.permute.xlu1 %684 }
 0x122   : > { %1308 = vperm.xlu0 %1873, %v2203_v17   ;;  %1312 = vperm.xlu1 %1877, %v2209_v18  }
 0x125   : > { %v2377_v25 = vpop.permute.xlu1 %689 }
 0x126   : > { %1876 = vset.pattern.permute.xlu0 %v2040_v1  ;;  %1878 = vset.pattern.permute.xlu1 %v2040_v1 }
 0x127   : > { %1387 = vperm.xlu0 %1876, %v2188_v14  }
 0x129   : > { %v2379_v30 = vpop.permute.xlu1 %875 }
 0x12d   : > { %v2381_v45 = vpop.permute.xlu1 %716 }
 0x147   : > { %v540_v47 = vpop.xlane.xlu1 %539 }
 0x148   : > { %v551_v49 = vmul.f32 0.00390625, %v540_v47 }
 0x14a   : > { %v579_v55 = vmul.f32 %v551_v49, %v551_v49 }
 0x156   : > { %v549_v43 = vpop.xlane.xlu1 %548 }
 0x157   : > { %v543_v44 = vpop.xlane.xlu0 %542  ;;  %v554_v58 = vmul.f32 0.00390625, %v549_v43 }
 0x158   : > { %v552_v14 = vmul.f32 0.00390625, %v543_v44  ;;  %v587_v44 = vsub.f32 %v2278_v21, %v551_v49 }
 0x159   : > { %v582_v3 = vmul.f32 %v554_v58, %v554_v58  ;;  %v593_v21 = vsub.f32 %v2293_v50, %v554_v58 }
 0x15a   : > { %v580_v52 = vmul.f32 %v552_v14, %v552_v14  ;;  %v568_v46 = vpop.xlane.xlu1 %567  ;;  %v589_v15 = vsub.f32 %v2297_v53, %v552_v14  ;;  %v590_v2 = vsub.f32 %v2299_v37, %v552_v14 }
 0x15b   : > { %v576_v13 = vmul.f32 0.00390625, %v568_v46  ;;  %v546_v22 = vpop.xlane.xlu0 %545 }
 0x15c   : > { %v553_v34 = vmul.f32 0.00390625, %v546_v22 }
 0x15d   : > { %v584_v51 = vsub.f32 %v576_v13, %v580_v52  ;;  %v588_v52 = vsub.f32 %v2280_v28, %v551_v49 }
 0x15e   : > { %v574_v48 = vpop.xlane.xlu1 %573  ;;  %v581_v24 = vmul.f32 %v553_v34, %v553_v34  ;;  %v592_v53 = vsub.f32 %v2311_v59, %v553_v34  ;;  %v594_v59 = vsub.f32 %v2295_v57, %v554_v58 }
 0x15f   : > { %v596_v63 = vadd.f32 1e-06, %v584_v51  ;;  %v565_v0 = vpop.xlane.xlu0 %564  ;;  %v578_v60 = vmul.f32 0.00390625, %v574_v48  ;;  %v591_v48 = vsub.f32 %v2309_v56, %v553_v34 }
 0x160   : > { %v575_v54 = vmul.f32 0.00390625, %v565_v0 }
 0x161   : > { %1881 = vrsqrt.f32 %v596_v63  ;;  %v586_v10 = vsub.f32 %v578_v60, %v582_v3 }
 0x162   : > { %v583_v61 = vsub.f32 %v575_v54, %v579_v55 }
 0x163   : > { %v571_v5 = vpop.xlane.xlu0 %570  ;;  %v598_v12 = vadd.f32 1e-06, %v586_v10 }
 0x164   : > { %v595_v7 = vadd.f32 1e-06, %v583_v61  ;;  %v577_v8 = vmul.f32 0.00390625, %v571_v5 }
 0x166   : > { %1883 = vrsqrt.f32 %v595_v7  ;;  %v585_v11 = vsub.f32 %v577_v8, %v581_v24 }
 0x168   : > { %v597_v62 = vadd.f32 1e-06, %v585_v11 }
 0x16a   : > { %1885 = vrsqrt.f32 %v597_v62 }
 0x16b   : > { %v1882_v4 = vpop.eup %1881  ;;  %1887 = vrsqrt.f32 %v598_v12 }
 0x16c   : > { %v605_v16 = vmul.f32 %v1882_v4, %v589_v15  ;;  %v606_v1 = vmul.f32 %v1882_v4, %v590_v2 }
 0x16e   : > { %v1751_v47 = vmul.f32 -1.442695, %v605_v16  ;;  %v1752_v43 = vmul.f32 -1.442695, %v606_v1 }
 0x170   : > { %v1884_v46 = vpop.eup %1883  ;;  %1889 = vpow2.f32 %v1751_v47 }
 0x171   : > { %1891 = vpow2.f32 %v1752_v43  ;;  %v603_v13 = vmul.f32 %v1884_v46, %v587_v44  ;;  %v604_v22 = vmul.f32 %v1884_v46, %v588_v52 }
 0x173   : > { %v1749_v51 = vmul.f32 -1.442695, %v603_v13  ;;  %v1750_v37 = vmul.f32 -1.442695, %v604_v22 }
 0x174   : > { %v1886_v14 = vpop.eup %1885 }
 0x175   : > { %v608_v63 = vmul.f32 %v1886_v14, %v592_v53  ;;  %1893 = vpow2.f32 %v1749_v51  ;;  %v607_v0 = vmul.f32 %v1886_v14, %v591_v48  ;;  %v1888_v54 = vpop.eup %1887 }
 0x176   : > { %1895 = vpow2.f32 %v1750_v37  ;;  %v609_v55 = vmul.f32 %v1888_v54, %v593_v21  ;;  %v610_v7 = vmul.f32 %v1888_v54, %v594_v59 }
 0x177   : > { %v1754_v28 = vmul.f32 -1.442695, %v608_v63  ;;  %v1753_v60 = vmul.f32 -1.442695, %v607_v0 }
 0x178   : > { %v1755_v56 = vmul.f32 -1.442695, %v609_v55  ;;  %v1756_v50 = vmul.f32 -1.442695, %v610_v7 }
 0x179   : > { %1897 = vpow2.f32 %v1754_v28  ;;  %v2447_v28 = vpop.permute.xlu0 %800 }
 0x17a   : > { %v1890_v49 = vpop.eup %1889 }
 0x17b   : > { %v1892_v61 = vpop.eup %1891  ;;  %v637_v3 = vadd.f32 1.0, %v1890_v49 }
 0x17c   : > { %v638_v5 = vadd.f32 1.0, %v1892_v61 }
 0x17d   : > { %1899 = vrcp.f32 %v637_v3 }
 0x17e   : > { %1901 = vpow2.f32 %v1753_v60 }
 0x17f   : > { %1903 = vrcp.f32 %v638_v5  ;;  %v1894_v34 = vpop.eup %1893 }
 0x180   : > { %v1896_v24 = vpop.eup %1895  ;;  %v635_v8 = vadd.f32 1.0, %v1894_v34  ;;  %1905 = vpow2.f32 %v1755_v56 }
 0x181   : > { %v636_v10 = vadd.f32 1.0, %v1896_v24 }
 0x182   : > { %1907 = vrcp.f32 %v635_v8 }
 0x183   : > { %1909 = vrcp.f32 %v636_v10  ;;  %v1898_v11 = vpop.eup %1897 }
 0x184   : > { %1911 = vpow2.f32 %v1756_v50  ;;  %v640_v15 = vadd.f32 1.0, %v1898_v11 }
 0x186   : > { %1913 = vrcp.f32 %v640_v15 }
 0x187   : > { %v1900_v62 = vpop.eup %1899 }
 0x188   : > { %v1902_v12 = vpop.eup %1901  ;;  %v2391_v57 = vmul.f32 %v1900_v62, %v605_v16 }
 0x189   : > { %v1904_v58 = vpop.eup %1903  ;;  %v639_v2 = vadd.f32 1.0, %v1902_v12 }
 0x18a   : > { %3213 = vst [vmem:[#allocation5_spill] sm:$0xff] %v2391_v57  ;;  %734 = vrot.lane.b32.xlu1 %v2391_v57, %s2041_s12  ;;  %v1906_v4 = vpop.eup %1905  ;;  %v2395_v47 = vmul.f32 %v1904_v58, %v606_v1 }
 0x18b   : > { %v641_v16 = vadd.f32 1.0, %v1906_v4  ;;  %1915 = vrcp.f32 %v639_v2 }
 0x18c   : > { %3214 = vst [vmem:[#allocation6_spill] sm:$0xff] %v2395_v47  ;;  %v1908_v43 = vpop.eup %1907 }
 0x18d   : > { %v2397_v44 = vmul.f32 %v1908_v43, %v603_v13  ;;  %v1910_v52 = vpop.eup %1909  ;;  %1917 = vrcp.f32 %v641_v16  ;;  %v2566_v43 = vld [vmem:[%s3190_s7] sm:$0xff] }
 0x18e   : > { %742 = vrot.lane.b32.xlu1 %v2395_v47, %s2041_s12  ;;  %v1912_v46 = vpop.eup %1911  ;;  %v2403_v53 = vmul.f32 %v1910_v52, %v604_v22 }
 0x18f   : > { %732 = vrot.lane.b32.xlu0 %v2397_v44, %s2041_s12  ;;  %v642_v1 = vadd.f32 1.0, %v1912_v46  ;;  %v1757_v46 = vrot.slane %v2566_v43, 10 }
 0x190   : > { %v1914_v13 = vpop.eup %1913 }
 0x191   : > { %1919 = vrcp.f32 %v642_v1  ;;  %v2413_v22 = vmul.f32 %v1914_v13, %v608_v63  ;;  %v2578_v1 = vand.u32 127, %v334_v20  ;;  %v2581_v13 = vmul.f32 %v1757_v46, %v2566_v43 }
 0x192   : > { %823 = vrot.lane.b32.xlu1 %v2397_v44, %s2042_s13 }
 0x193   : > { %740 = vrot.lane.b32.xlu0 %v2403_v53, %s2041_s12  ;;  %vm750_vm0 = vcmp.lt.s32.totalorder %v2578_v1, 17  ;;  %v772_v42 = vrot.slane %v2581_v13, %v2243_v32  ;;  %vm839_vm1 = vcmp.lt.s32.totalorder %v2578_v1, 16  ;;  %vm922_vm2 = vcmp.lt.s32.totalorder %v2578_v1, 15 }
 0x194   : > { %vm1010_vm3 = vcmp.lt.s32.totalorder %v2578_v1, 1  ;;  %vm1093_vm4 = vcmp.lt.s32.totalorder %v2578_v1, 127  ;;  %vm1176_vm5 = vcmp.lt.s32.totalorder %v2578_v1, 113  ;;  %vm1347_vm6 = vcmp.lt.s32.totalorder %v2578_v1, 111 }
 0x195   : > { %v1916_v51 = vpop.eup %1915  ;;  %vm1264_vm7 = vcmp.lt.s32.totalorder %v2578_v1, 112 }
 0x196   : > { %825 = vrot.lane.b32.xlu1 %v2391_v57, %s2042_s13  ;;  %v2417_v37 = vmul.f32 %v1916_v51, %v607_v0  ;;  %v2437_v0 = vpop.permute.xlu1 %721 }
 0x197   : > { %831 = vrot.lane.b32.xlu0 %v2403_v53, %s2042_s13  ;;  %v1918_v14 = vpop.eup %1917 }
 0x198   : > { %v2423_v48 = vmul.f32 %v1918_v14, %v609_v55  ;;  %v2457_v55 = vpop.permute.xlu0 %879 }
 0x19a   : > { %833 = vrot.lane.b32.xlu1 %v2395_v47, %s2042_s13  ;;  %v2445_v21 = vpop.permute.xlu1 %804 }
 0x19b   : > { %744 = vrot.lane.b32.xlu0 %v2413_v22, %s2041_s12  ;;  %v1920_v63 = vpop.eup %1919 }
 0x19c   : > { %v2429_v54 = vmul.f32 %v1920_v63, %v610_v7  ;;  %v2467_v61 = vpop.permute.xlu0 %883  ;;  %v768_v63 = vrot.slane %v2581_v13, %v2240_v31 }
 0x19e   : > { %736 = vrot.lane.b32.xlu1 %v2417_v37, %s2041_s12  ;;  %v2455_v49 = vpop.permute.xlu1 %963 }
 0x19f   : > { %906 = vrot.lane.b32.xlu0 %v2397_v44, %s2043_s17 }
 0x1a0   : > { %v2477_v59 = vpop.permute.xlu0 %967 }
 0x1a2   : > { %738 = vrot.lane.b32.xlu1 %v2423_v48, %s2041_s12  ;;  %v2465_v60 = vpop.permute.xlu1 %887 }
 0x1a3   : > { %914 = vrot.lane.b32.xlu0 %v2403_v53, %s2043_s17 }
 0x1a4   : > { %v2487_v7 = vpop.permute.xlu0 %971 }
 0x1a6   : > { %746 = vrot.lane.b32.xlu1 %v2429_v54, %s2041_s12  ;;  %v2475_v3 = vpop.permute.xlu1 %1046 }
 0x1a7   : > { %835 = vrot.lane.b32.xlu0 %v2413_v22, %s2042_s13  ;;  %3215 = vst [vmem:[#allocation7_spill] sm:$0xff] %v2475_v3 }
 0x1a8   : > { %v2497_v34 = vpop.permute.xlu0 %1050 }
 0x1aa   : > { %908 = vrot.lane.b32.xlu1 %v2391_v57, %s2043_s17  ;;  %v2485_v5 = vpop.permute.xlu1 %975 }
 0x1ab   : > { %994 = vrot.lane.b32.xlu0 %v2397_v44, %s2044_s18 }
 0x1ac   : > { %v2507_v8 = vpop.permute.xlu0 %1054 }
 0x1ae   : > { %916 = vrot.lane.b32.xlu1 %v2395_v47, %s2043_s17  ;;  %v2495_v56 = vpop.permute.xlu1 %1129 }
 0x1af   : > { %1002 = vrot.lane.b32.xlu0 %v2403_v53, %s2044_s18  ;;  %3216 = vst [vmem:[#allocation8_spill] sm:$0xff] %v2495_v56 }
 0x1b0   : > { %v2517_v10 = vpop.permute.xlu0 %1133 }
 0x1b2   : > { %827 = vrot.lane.b32.xlu1 %v2417_v37, %s2042_s13  ;;  %v2505_v24 = vpop.permute.xlu1 %1058 }
 0x1b3   : > { %918 = vrot.lane.b32.xlu0 %v2413_v22, %s2043_s17 }
 0x1b4   : > { %v2527_v62 = vpop.permute.xlu0 %1137 }
 0x1b5   : > { %3219 = vst [vmem:[#allocation11_spill] sm:$0xff] %v2527_v62 }
 0x1b6   : > { %829 = vrot.lane.b32.xlu1 %v2423_v48, %s2042_s13  ;;  %v2515_v50 = vpop.permute.xlu1 %1217 }
 0x1b7   : > { %1077 = vrot.lane.b32.xlu0 %v2397_v44, %s2045_s19  ;;  %3217 = vst [vmem:[#allocation9_spill] sm:$0xff] %v2515_v50 }
 0x1b8   : > { %v2537_v58 = vpop.permute.xlu0 %1221 }
 0x1b9   : > { %3221 = vst [vmem:[#allocation13_spill] sm:$0xff] %v2537_v58 }
 0x1ba   : > { %837 = vrot.lane.b32.xlu1 %v2429_v54, %s2042_s13  ;;  %v2525_v11 = vpop.permute.xlu1 %1141 }
 0x1bb   : > { %1085 = vrot.lane.b32.xlu0 %v2403_v53, %s2045_s19  ;;  %3218 = vst [vmem:[#allocation10_spill] sm:$0xff] %v2525_v11 }
 0x1bc   : > { %v2546_v2 = vpop.permute.xlu0 %1225 }
 0x1bd   : > { %3223 = vst [vmem:[#allocation15_spill] sm:$0xff] %v2546_v2  ;;  %v855_v2 = vrot.slane %v2566_v43, %v2243_v32 }
 0x1be   : > { %996 = vrot.lane.b32.xlu1 %v2391_v57, %s2044_s18  ;;  %v2535_v12 = vpop.permute.xlu1 %1300 }
 0x1bf   : > { %1006 = vrot.lane.b32.xlu0 %v2413_v22, %s2044_s18  ;;  %3220 = vst [vmem:[#allocation12_spill] sm:$0xff] %v2535_v12 }
 0x1c2   : > { %1004 = vrot.lane.b32.xlu1 %v2395_v47, %s2044_s18  ;;  %v2544_v15 = vpop.permute.xlu1 %1229 }
 0x1c3   : > { %1160 = vrot.lane.b32.xlu0 %v2397_v44, %s2046_s20  ;;  %3222 = vst [vmem:[#allocation14_spill] sm:$0xff] %v2544_v15  ;;  %v2602_v15 = vrot.slane %v772_v42, %v2240_v31  ;;  %v693_v42 = vmul.f32 %v2255_v40, %v2403_v53 }
 0x1c6   : > { %910 = vrot.lane.b32.xlu1 %v2417_v37, %s2043_s17  ;;  %v2555_v4 = vpop.permute.xlu1 %1383 }
 0x1c7   : > { %1168 = vrot.lane.b32.xlu0 %v2403_v53, %s2046_s20  ;;  %3224 = vst [vmem:[#allocation16_spill] sm:$0xff] %v2555_v4  ;;  %v1758_v4 = vrot.slane %v2566_v43, 11 }
 0x1ca   : > { %912 = vrot.lane.b32.xlu1 %v2423_v48, %s2043_s17  ;;  %v2570_v52 = vpop.permute.xlu1 %1312 }
 0x1cb   : > { %1089 = vrot.lane.b32.xlu0 %v2413_v22, %s2045_s19  ;;  %3226 = vst [vmem:[#allocation18_spill] sm:$0xff] %v2570_v52  ;;  %v2599_v52 = vrot.slane %v768_v63, %v2240_v31  ;;  %v695_v63 = vmul.f32 %v2362_v19, %v2395_v47 }
 0x1ce   : > { %920 = vrot.lane.b32.xlu1 %v2429_v54, %s2043_s17  ;;  %s296_s17 = sand.u32 1, %s2022_s28  }
 0x1cf   : > { %1248 = vrot.lane.b32.xlu0 %v2397_v44, %s2047_s21 }
 0x1d2   : > { %1079 = vrot.lane.b32.xlu1 %v2391_v57, %s2045_s19 }
 0x1d3   : > { %1256 = vrot.lane.b32.xlu0 %v2403_v53, %s2047_s21 }
 0x1d6   : > { %1087 = vrot.lane.b32.xlu1 %v2395_v47, %s2045_s19 }
 0x1d7   : > { %1166 = vrot.lane.b32.xlu0 %v2423_v48, %s2046_s20 }
 0x1da   : > { %998 = vrot.lane.b32.xlu1 %v2417_v37, %s2044_s18 }
 0x1db   : > { %1174 = vrot.lane.b32.xlu0 %v2429_v54, %s2046_s20 }
 0x1de   : > { %1000 = vrot.lane.b32.xlu1 %v2423_v48, %s2044_s18 }
 0x1df   : > { %1333 = vrot.lane.b32.xlu0 %v2391_v57, %s2048_s22 }
 0x1e2   : > { %1008 = vrot.lane.b32.xlu1 %v2429_v54, %s2044_s18  ;;  %s1746_s18 = sshll.u32 %s296_s17, 3 }
 0x1e3   : > { %1341 = vrot.lane.b32.xlu0 %v2395_v47, %s2048_s22 }
 0x1e6   : > { %1162 = vrot.lane.b32.xlu1 %v2391_v57, %s2046_s20 }
 0x1e7   : > { %1395 = vperm.xlu0 %1876, %v2209_v18   ;;  %v2557_v18 = vpop.permute.xlu0 %1304 }
 0x1e8   : > { %3225 = vst [vmem:[#allocation17_spill] sm:$0xff] %v2557_v18 }
 0x1ea   : > { %1170 = vrot.lane.b32.xlu1 %v2395_v47, %s2046_s20 }
 0x1eb   : > { %1260 = vrot.lane.b32.xlu0 %v2413_v22, %s2047_s21  ;;  %v2572_v16 = vpop.permute.xlu0 %1308 }
 0x1ec   : > { %1880 = vset.pattern.permute.xlu0 %v3194_v9  ;;  %3227 = vst [vmem:[#allocation19_spill] sm:$0xff] %v2572_v16  ;;  %v851_v16 = vrot.slane %v2566_v43, %v2240_v31 }
 0x1ee   : > { %1081 = vrot.lane.b32.xlu1 %v2417_v37, %s2045_s19  ;;  %v2629_v3 = vrot.slane %v851_v16, %v2240_v31 }
 0x1ef   : > { %1335 = vrot.lane.b32.xlu0 %v2417_v37, %s2048_s22  ;;  %v2583_v14 = vpop.permute.xlu0 %1387 }
 0x1f0   : > { %3228 = vst [vmem:[#allocation20_spill] sm:$0xff] %v2583_v14  ;;  %v2632_v14 = vrot.slane %v855_v2, %v2240_v31 }
 0x1f2   : > { %1083 = vrot.lane.b32.xlu1 %v2423_v48, %s2045_s19 }
 0x1f3   : > { %1343 = vrot.lane.b32.xlu0 %v2413_v22, %s2048_s22 }
 0x1f6   : > { %1091 = vrot.lane.b32.xlu1 %v2429_v54, %s2045_s19  ;;  %s1776_s19 = sshll.u32 %s2117_s9, 7  ;;  %s2050_s9 = smov [#allocation2]  }
 0x1f7   : > { %s3141_s24 = scalar_lea.hbm %s3191_s8, %s1776_s19  ;;  %s1972_s10 = sshll.u32 %s2050_s9, 4  ;;  %s1973_s10 = int_to_ptr.vmem [resolvable:$false] %s1972_s10 }
 0x1f8   : > { %s1974_s12 = scalar_lea.vmem %s1973_s10, 256 }
 0x1fa   : > { %1250 = vrot.lane.b32.xlu1 %v2391_v57, %s2047_s21 }
 0x1fc   : > { %v735_v51 = vpop.permute.xlu1 %734 }
 0x1fe   : > { %1258 = vrot.lane.b32.xlu1 %v2395_v47, %s2047_s21 }
 0x200   : > { %v743_v36 = vpop.permute.xlu1 %742 }
 0x201   : > { %v752_v20 = vsel %vm750_vm0, %v735_v51, %v743_v36  ;;  %v756_v46 = vsel %vm750_vm0, %v743_v36, %v735_v51  ;;  %v733_v9 = vpop.permute.xlu0 %732  ;;  %v694_v36 = vmul.f32 %v2362_v19, %v2391_v57  ;;  %v692_v51 = vmul.f32 %v2255_v40, %v2397_v44 }
 0x202   : > { %1164 = vrot.lane.b32.xlu1 %v2417_v37, %s2046_s20  ;;  %v785_v12 = vmul.f32 %v2599_v52, %v756_v46  ;;  %v786_v57 = vmul.f32 %v2602_v15, %v752_v20  ;;  %v725_v20 = vadd.f32 %v2367_v33, %v693_v42 }
 0x203   : > { %v724_v46 = vadd.f32 %v2367_v33, %v692_v51  ;;  %v726_v51 = vadd.f32 %v2369_v38, %v694_v36 }
 0x204   : > { %v824_v11 = vpop.permute.xlu1 %823  ;;  %v810_v16 = vmul.f32 %v2373_v6, %v786_v57 }
 0x205   : > { %v741_v62 = vpop.permute.xlu0 %740 }
 0x206   : > { %1172 = vrot.lane.b32.xlu1 %v2413_v22, %s2046_s20  ;;  %v751_v50 = vsel %vm750_vm0, %v733_v9, %v741_v62  ;;  %v755_v19 = vsel %vm750_vm0, %v741_v62, %v733_v9  ;;  %v809_v62 = vmul.f32 %v2373_v6, %v785_v12  ;;  %s298_s20 = scalar_lea.vmem [#allocation2], %s1746_s18 }
 0x207   : > { %v783_v40 = vmul.f32 %v2599_v52, %v755_v19  ;;  %v784_v47 = vmul.f32 %v2602_v15, %v751_v50  ;;  %v934_v50 = vmul.f32 %v1758_v4, %v2566_v43 }
 0x208   : > { %v826_v56 = vpop.permute.xlu1 %825 }
 0x209   : > { %v807_v18 = vmul.f32 %v2371_v29, %v783_v40  ;;  %v808_v58 = vmul.f32 %v2371_v29, %v784_v47  ;;  %v832_v9 = vpop.permute.xlu0 %831  ;;  %v727_v29 = vadd.f32 %v2369_v38, %v695_v63 }
 0x20a   : > { %1331 = vrot.lane.b32.xlu1 %v2397_v44, %s2048_s22  ;;  %v840_v2 = vsel %vm839_vm1, %v824_v11, %v832_v9  ;;  %v844_v33 = vsel %vm839_vm1, %v832_v9, %v824_v11 }
 0x20b   : > { %v866_v47 = vmul.f32 %v2629_v3, %v844_v33  ;;  %v867_v42 = vmul.f32 %v2632_v14, %v840_v2  ;;  %v815_v4 = vadd.f32 %v807_v18, %v724_v46  ;;  %v816_v40 = vadd.f32 %v808_v58, %v725_v20 }
 0x20c   : > { %v834_v19 = vpop.permute.xlu1 %833  ;;  %v817_v18 = vadd.f32 %v809_v62, %v726_v51  ;;  %v818_v58 = vadd.f32 %v810_v16, %v727_v29  ;;  %v939_v46 = vrot.slane %v934_v50, %v2240_v31  ;;  %v943_v20 = vrot.slane %v934_v50, %v2243_v32 }
 0x20d   : > { %v841_v6 = vsel %vm839_vm1, %v826_v56, %v834_v19  ;;  %v845_v57 = vsel %vm839_vm1, %v834_v19, %v826_v56  ;;  %v890_v12 = vmul.f32 %v2379_v30, %v866_v47  ;;  %v891_v11 = vmul.f32 %v2379_v30, %v867_v42  ;;  %v745_v63 = vpop.permute.xlu0 %744 }
 0x20e   : > { %v868_v36 = vmul.f32 %v2629_v3, %v845_v57  ;;  %v869_v38 = vmul.f32 %v2632_v14, %v841_v6  ;;  %1339 = vrot.lane.b32.xlu1 %v2403_v53, %s2048_s22  ;;  %v2672_v32 = vrot.slane %v939_v46, %v2240_v31 }
 0x20f   : > { %v898_v9 = vadd.f32 %v890_v12, %v815_v4  ;;  %v899_v56 = vadd.f32 %v891_v11, %v816_v40 }
 0x210   : > { %v892_v2 = vmul.f32 %v2457_v55, %v868_v36  ;;  %v893_v30 = vmul.f32 %v2457_v55, %v869_v38  ;;  %v737_v33 = vpop.permute.xlu1 %736  ;;  %v2675_v55 = vrot.slane %v943_v20, %v2240_v31 }
 0x211   : > { %v753_v47 = vsel %vm750_vm0, %v737_v33, %v745_v63  ;;  %v757_v42 = vsel %vm750_vm0, %v745_v63, %v737_v33  ;;  %v907_v16 = vpop.permute.xlu0 %906 }
 0x212   : > { %v900_v19 = vadd.f32 %v892_v2, %v817_v18  ;;  %v901_v62 = vadd.f32 %v893_v30, %v818_v58  ;;  %1391 = vperm.xlu1 %1878, %v2203_v17   ;;  %v3229_v17 = vmov 0   ;;  %v787_v2 = vmul.f32 %v2599_v52, %v757_v42 }
 0x213   : > { %v788_v30 = vmul.f32 %v2602_v15, %v753_v47  ;;  %v696_v42 = vmul.f32 %v2375_v39, %v2417_v37  ;;  %v697_v47 = vmul.f32 %v2375_v39, %v2413_v22 }
 0x214   : > { %v739_v51 = vpop.permute.xlu1 %738 }
 0x215   : > { %v915_v50 = vpop.permute.xlu0 %914 }
 0x216   : > { %1252 = vrot.lane.b32.xlu1 %v2417_v37, %s2047_s21  ;;  %v923_v29 = vsel %vm922_vm2, %v907_v16, %v915_v50  ;;  %v927_v4 = vsel %vm922_vm2, %v915_v50, %v907_v16 }
 0x217   : > { %1879 = vset.pattern.permute.xlu1 %v3229_v17  ;;  %v954_v40 = vmul.f32 %v2672_v32, %v927_v4  ;;  %v955_v6 = vmul.f32 %v2675_v55, %v923_v29  ;;  %v811_v4 = vmul.f32 %v2447_v28, %v787_v2  ;;  %v812_v17 = vmul.f32 %v2447_v28, %v788_v30 }
 0x218   : > { %v747_v57 = vpop.permute.xlu1 %746 }
 0x219   : > { %v754_v31 = vsel %vm750_vm0, %v739_v51, %v747_v57  ;;  %v758_v12 = vsel %vm750_vm0, %v747_v57, %v739_v51  ;;  %v978_v11 = vmul.f32 %v2455_v49, %v954_v40  ;;  %v979_v36 = vmul.f32 %v2455_v49, %v955_v6  ;;  %v836_v38 = vpop.permute.xlu0 %835 }
 0x21a   : > { %1254 = vrot.lane.b32.xlu1 %v2423_v48, %s2047_s21 }
 0x21b   : > { %v2694_v63 = vadd.f32 %v978_v11, %v898_v9  ;;  %v2696_v18 = vadd.f32 %v979_v36, %v899_v56  ;;  %v729_v36 = vadd.f32 %v2381_v45, %v697_v47 }
 0x21c   : > { %v909_v58 = vpop.permute.xlu1 %908 }
 0x21d   : > { %v2698_v46 = vpop.permute.xlu0 %994 }
 0x21e   : > { %1262 = vrot.lane.b32.xlu1 %v2429_v54, %s2047_s21  ;;  %s1683_s21 = sshll.u32 %s298_s20, 4  ;;  %s3143_s21 = int_to_ptr.vmem [resolvable:$true] %s1683_s21 }
 0x21f   : > { %s1968_s26 = scalar_lea.vmem %s3143_s21, 128  ;;  %p1975_p0 = scmp.lt.s32.totalorder %s3143_s21, %s1973_s10 }
 0x220   : > { %v917_v20 = vpop.permute.xlu1 %916  ;;  %p1969_p11 = scmp.ne.s32.totalorder %s3143_s21, %s1968_s26  ;;  %p1976_p1 = scmp.lt.s32.totalorder %s1974_s12, %s1968_s26 }
 0x221   : > { %v924_v49 = vsel %vm922_vm2, %v909_v58, %v917_v20  ;;  %v928_v9 = vsel %vm922_vm2, %v917_v20, %v909_v58  ;;  %v2710_v16 = vpop.permute.xlu0 %1002  ;;  %v789_v20 = vmul.f32 %v2599_v52, %v758_v12 }
 0x222   : > { %v956_v56 = vmul.f32 %v2672_v32, %v928_v9  ;;  %v957_v33 = vmul.f32 %v2675_v55, %v924_v49  ;;  %1337 = vrot.lane.b32.xlu1 %v2423_v48, %s2048_s22  ;;  %v698_v9 = vmul.f32 %v2377_v25, %v2423_v48  ;;  %p1970_p12 = pnand %p1969_p11, %p2134_p5  ;;  %p1977_p2 = por %p1976_p1, %p1975_p0 }
 0x223   : > { %v813_v52 = vmul.f32 %v2445_v21, %v789_v20 }
 0x224   : > { %v980_v51 = vmul.f32 %v2477_v59, %v956_v56  ;;  %v981_v50 = vmul.f32 %v2477_v59, %v957_v33  ;;  %v828_v29 = vpop.permute.xlu1 %827  ;;  %v728_v59 = vadd.f32 %v2381_v45, %v696_v42  ;;  %v699_v45 = vmul.f32 %v2377_v25, %v2429_v54  ;;  %p1971_p13 = pneg %p1970_p12 }
 0x225   : > { %v842_v40 = vsel %vm839_vm1, %v828_v29, %v836_v38  ;;  %v846_v6 = vsel %vm839_vm1, %v836_v38, %v828_v29  ;;  %v919_v39 = vpop.permute.xlu0 %918  ;;  %v790_v38 = vmul.f32 %v2602_v15, %v754_v31  ;;  %v730_v47 = vadd.f32 %v2437_v0, %v698_v9 }
 0x226   : > { %v2726_v57 = vadd.f32 %v980_v51, %v900_v19  ;;  %v2728_v11 = vadd.f32 %v981_v50, %v901_v62  ;;  %1345 = vrot.lane.b32.xlu1 %v2429_v54, %s2048_s22  ;;  %v870_v28 = vmul.f32 %v2629_v3, %v846_v6  ;;  %v871_v58 = vmul.f32 %v2632_v14, %v842_v40  ;;  %p1978_p3 = pnand %p1977_p2, %p1971_p13 }
 0x227   : > { %v819_v2 = vadd.f32 %v811_v4, %v728_v59  ;;  %v820_v62 = vadd.f32 %v812_v17, %v729_v36  ;;  %v814_v15 = vmul.f32 %v2445_v21, %v790_v38  ;;  %v731_v51 = vadd.f32 %v2437_v0, %v699_v45 }
 0x228   : > { %v830_v19 = vpop.permute.xlu1 %829  ;;  %v894_v30 = vmul.f32 %v2467_v61, %v870_v28  ;;  %v895_v49 = vmul.f32 %v2467_v61, %v871_v58  ;;  %v821_v29 = vadd.f32 %v813_v52, %v730_v47  ;;  %v1022_v47 = vrot.slane %v2566_v43, %v2248_v35 }
 0x229   : > { %v2744_v56 = vpop.permute.xlu0 %1077  ;;  %v822_v4 = vadd.f32 %v814_v15, %v731_v51  ;;  %v3230_v51 = vsub.s32 6, %v2221_v23 }
 0x22a   : > { %v902_v33 = vadd.f32 %v894_v30, %v819_v2  ;;  %v903_v42 = vadd.f32 %v895_v49, %v820_v62 }
 0x22c   : > { %v838_v31 = vpop.permute.xlu1 %837 }
 0x22d   : > { %v843_v12 = vsel %vm839_vm1, %v830_v19, %v838_v31  ;;  %v847_v61 = vsel %vm839_vm1, %v838_v31, %v830_v19  ;;  %v2758_v40 = vpop.permute.xlu0 %1085 }
 0x22e   : > { %v872_v25 = vmul.f32 %v2629_v3, %v847_v61  ;;  %v873_v50 = vmul.f32 %v2632_v14, %v843_v12 }
 0x230   : > { %v896_v17 = vmul.f32 %v2465_v60, %v872_v25  ;;  %v897_v21 = vmul.f32 %v2465_v60, %v873_v50  ;;  %v2760_v6 = vpop.permute.xlu1 %996  ;;  %v1026_v25 = vrot.slane %v2566_v43, %v3230_v51 }
 0x231   : > { %v1007_v58 = vpop.permute.xlu0 %1006 }
 0x232   : > { %v904_v59 = vadd.f32 %v896_v17, %v821_v29  ;;  %v905_v36 = vadd.f32 %v897_v21, %v822_v4 }
 0x234   : > { %v2762_v28 = vpop.permute.xlu1 %1004 }
 0x235   : > { %v2770_v38 = vpop.permute.xlu0 %1160 }
 0x238   : > { %v911_v0 = vpop.permute.xlu1 %910 }
 0x239   : > { %v925_v3 = vsel %vm922_vm2, %v911_v0, %v919_v39  ;;  %v929_v14 = vsel %vm922_vm2, %v919_v39, %v911_v0  ;;  %v2778_v52 = vpop.permute.xlu0 %1168 }
 0x23a   : > { %v958_v20 = vmul.f32 %v2672_v32, %v929_v14  ;;  %v959_v60 = vmul.f32 %v2675_v55, %v925_v3 }
 0x23c   : > { %v982_v19 = vmul.f32 %v2487_v7, %v958_v20  ;;  %v983_v2 = vmul.f32 %v2487_v7, %v959_v60  ;;  %v913_v62 = vpop.permute.xlu1 %912 }
 0x23d   : > { %v2789_v50 = vpop.permute.xlu0 %1089 }
 0x23e   : > { %v990_v30 = vadd.f32 %v982_v19, %v902_v33  ;;  %v991_v49 = vadd.f32 %v983_v2, %v903_v42 }
 0x240   : > { %v921_v9 = vpop.permute.xlu1 %920 }
 0x241   : > { %v926_v45 = vsel %vm922_vm2, %v913_v62, %v921_v9  ;;  %v930_v39 = vsel %vm922_vm2, %v921_v9, %v913_v62  ;;  %v2802_v21 = vpop.permute.xlu0 %1248 }
 0x242   : > { %v960_v15 = vmul.f32 %v2672_v32, %v930_v39  ;;  %v961_v31 = vmul.f32 %v2675_v55, %v926_v45  ;;  %v2793_v32 = vrot.slane %v1022_v47, %v2248_v35 }
 0x244   : > { %v984_v12 = vmul.f32 %v2485_v5, %v960_v15  ;;  %v985_v7 = vmul.f32 %v2485_v5, %v961_v31  ;;  %v1080_v61 = vpop.permute.xlu1 %1079  ;;  %v2796_v5 = vrot.slane %v1026_v25, %v2248_v35  ;;  %v1759_v31 = vrot.slane %v2566_v43, 9 }
 0x245   : > { %v2812_v60 = vpop.permute.xlu0 %1256  ;;  %v1105_v25 = vrot.slane %v2566_v43, %v2258_v41 }
 0x246   : > { %v992_v33 = vadd.f32 %v984_v12, %v904_v59  ;;  %v993_v42 = vadd.f32 %v985_v7, %v905_v36  ;;  %v1188_v7 = vmul.f32 %v1759_v31, %v2566_v43  ;;  %v1363_v31 = vrot.slane %v2581_v13, %v2232_v27 }
 0x248   : > { %v1088_v29 = vpop.permute.xlu1 %1087 }
 0x24c   : > { %v999_v55 = vpop.permute.xlu1 %998 }
 0x24d   : > { %v1013_v4 = vsel %vm1010_vm3, %v999_v55, %v1007_v58  ;;  %v1017_v17 = vsel %vm1010_vm3, %v1007_v58, %v999_v55 }
 0x24e   : > { %v1041_v59 = vmul.f32 %v2793_v32, %v1017_v17  ;;  %v1042_v36 = vmul.f32 %v2796_v5, %v1013_v4  ;;  %v1193_v4 = vrot.slane %v1188_v7, %v2229_v26  ;;  %v1197_v17 = vrot.slane %v1188_v7, %v2232_v27 }
 0x250   : > { %v1065_v0 = vmul.f32 %v2507_v8, %v1041_v59  ;;  %v1066_v3 = vmul.f32 %v2507_v8, %v1042_v36  ;;  %v1001_v14 = vpop.permute.xlu1 %1000  ;;  %v1099_v36 = vsel %vm1093_vm4, %v1088_v29, %v1080_v61 }
 0x252   : > { %v2808_v35 = vadd.f32 %v1065_v0, %v990_v30  ;;  %v2810_v20 = vadd.f32 %v1066_v3, %v991_v49  ;;  %v2822_v49 = vpop.permute.xlu0 %1166  ;;  %v2857_v3 = vrot.slane %v1105_v25, %v2258_v41 }
 0x254   : > { %v1009_v19 = vpop.permute.xlu1 %1008 }
 0x255   : > { %v1014_v58 = vsel %vm1010_vm3, %v1001_v14, %v1009_v19  ;;  %v1018_v2 = vsel %vm1010_vm3, %v1009_v19, %v1001_v14  ;;  %v2866_v19 = vrot.slane %v1193_v4, %v2229_v26 }
 0x256   : > { %v1043_v62 = vmul.f32 %v2793_v32, %v1018_v2  ;;  %v1044_v9 = vmul.f32 %v2796_v5, %v1014_v58  ;;  %v2830_v47 = vpop.permute.xlu0 %1174  ;;  %v2869_v58 = vrot.slane %v1197_v17, %v2229_v26 }
 0x258   : > { %v1067_v8 = vmul.f32 %v2505_v24, %v1043_v62  ;;  %v1068_v30 = vmul.f32 %v2505_v24, %v1044_v9  ;;  %v1163_v45 = vpop.permute.xlu1 %1162  ;;  %v3231_v24 = vsub.s32 7, %v2221_v23  ;;  %v1095_v23 = vsel %vm1093_vm4, %v1080_v61, %v1088_v29 }
 0x259   : > { %v1122_v29 = vmul.f32 %v2857_v3, %v1095_v23  ;;  %v1276_v9 = vrot.slane %v2566_v43, %v2229_v26 }
 0x25a   : > { %v2824_v39 = vadd.f32 %v1067_v8, %v992_v33  ;;  %v2826_v15 = vadd.f32 %v1068_v30, %v993_v42  ;;  %v1109_v55 = vrot.slane %v2566_v43, %v3231_v24  ;;  %v1012_v33 = vsel %vm1010_vm3, %v2760_v6, %v2762_v28  ;;  %v1334_v0 = vpop.permute.xlu0 %1333 }
 0x25b   : > { %v1016_v42 = vsel %vm1010_vm3, %v2762_v28, %v2760_v6  ;;  %v1040_v14 = vmul.f32 %v2796_v5, %v1012_v33  ;;  %v1280_v8 = vrot.slane %v2566_v43, %v2232_v27  ;;  %v1359_v30 = vrot.slane %v2581_v13, %v2229_v26 }
 0x25c   : > { %v1171_v12 = vpop.permute.xlu1 %1170  ;;  %v2860_v6 = vrot.slane %v1109_v55, %v2258_v41  ;;  %v1039_v28 = vmul.f32 %v2793_v32, %v1016_v42  ;;  %v1146_v43 = vmul.f32 %v2517_v10, %v1122_v29  ;;  %v2896_v27 = vrot.slane %v1276_v9, %v2229_v26 }
 0x25d   : > { %v1178_v41 = vsel %vm1176_vm5, %v1163_v45, %v1171_v12  ;;  %v1182_v62 = vsel %vm1176_vm5, %v1171_v12, %v1163_v45  ;;  %v1064_v25 = vmul.f32 %v2497_v34, %v1040_v14  ;;  %v2899_v13 = vrot.slane %v1280_v8, %v2229_v26 }
 0x25e   : > { %v1123_v2 = vmul.f32 %v2860_v6, %v1099_v36  ;;  %v1063_v7 = vmul.f32 %v2497_v34, %v1039_v28  ;;  %v1342_v24 = vpop.permute.xlu0 %1341  ;;  %v1210_v45 = vmul.f32 %v2866_v19, %v1178_v41  ;;  %v1211_v12 = vmul.f32 %v2869_v58, %v1182_v62  ;;  %v3232_v28 = vld [vmem:[#allocation13_spill] sm:$0xff] }
 0x25f   : > { %v2902_v34 = vrot.slane %v1359_v30, %v2229_v26  ;;  %v2905_v42 = vrot.slane %v1363_v31, %v2229_v26  ;;  %v1072_v17 = vadd.f32 %v1064_v25, %v2728_v11  ;;  %v1349_v23 = vsel %vm1347_vm6, %v1334_v0, %v1342_v24  ;;  %v3233_v31 = vld [vmem:[#allocation17_spill] sm:$0xff] }
 0x260   : > { %v2832_v51 = vpop.permute.xlu1 %1081  ;;  %v1147_v33 = vmul.f32 %v2517_v10, %v1123_v2  ;;  %v1071_v4 = vadd.f32 %v1063_v7, %v2726_v57  ;;  %v1353_v10 = vsel %vm1347_vm6, %v1342_v24, %v1334_v0  ;;  %v1011_v36 = vsel %vm1010_vm3, %v2698_v46, %v2710_v16 }
 0x261   : > { %v1015_v26 = vsel %vm1010_vm3, %v2710_v16, %v2698_v46  ;;  %v1234_v57 = vmul.f32 %v3232_v28, %v1210_v45  ;;  %v1235_v11 = vmul.f32 %v3232_v28, %v1211_v12  ;;  %v1376_v62 = vmul.f32 %v2902_v34, %v1349_v23 }
 0x262   : > { %v1154_v29 = vadd.f32 %v1146_v43, %v1071_v4  ;;  %v1155_v2 = vadd.f32 %v1147_v33, %v1072_v17  ;;  %v1377_v9 = vmul.f32 %v2905_v42, %v1353_v10  ;;  %v1037_v45 = vmul.f32 %v2793_v32, %v1015_v26  ;;  %v3234_v33 = vld [vmem:[#allocation20_spill] sm:$0xff] }
 0x263   : > { %v1038_v12 = vmul.f32 %v2796_v5, %v1011_v36  ;;  %v1098_v43 = vsel %vm1093_vm4, %v2758_v40, %v2744_v56  ;;  %v1400_v4 = vmul.f32 %v3234_v33, %v1376_v62  ;;  %v1177_v32 = vsel %vm1176_vm5, %v2770_v38, %v2778_v52 }
 0x264   : > { %v2849_v59 = vpop.permute.xlu1 %1083  ;;  %v1242_v16 = vadd.f32 %v1234_v57, %v1154_v29  ;;  %v1243_v30 = vadd.f32 %v1235_v11, %v1155_v2  ;;  %v1401_v17 = vmul.f32 %v3234_v33, %v1377_v9  ;;  %v1181_v5 = vsel %vm1176_vm5, %v2778_v52, %v2770_v38  ;;  %v3235_v57 = vld [vmem:[#allocation7_spill] sm:$0xff] }
 0x265   : > { %v1061_v11 = vmul.f32 %v3235_v57, %v1037_v45  ;;  %v1269_v38 = vsel %vm1264_vm7, %v2812_v60, %v2802_v21  ;;  %v1062_v52 = vmul.f32 %v3235_v57, %v1038_v12  ;;  %v1208_v29 = vmul.f32 %v2866_v19, %v1177_v32  ;;  %v3238_v12 = vld [vmem:[#allocation12_spill] sm:$0xff] }
 0x266   : > { %v1209_v2 = vmul.f32 %v2869_v58, %v1181_v5  ;;  %v2983_v33 = vpop.permute.xlu0 %1395 }
 0x268   : > { %v2871_v61 = vpop.permute.xlu1 %1091 }
 0x26c   : > { %v1251_v55 = vpop.permute.xlu1 %1250 }
 0x270   : > { %v1259_v14 = vpop.permute.xlu1 %1258 }
 0x271   : > { %v1266_v0 = vsel %vm1264_vm7, %v1251_v55, %v1259_v14  ;;  %v1270_v41 = vsel %vm1264_vm7, %v1259_v14, %v1251_v55  ;;  %v1094_v55 = vsel %vm1093_vm4, %v2744_v56, %v2758_v40  ;;  %v1121_v56 = vmul.f32 %v2860_v6, %v1098_v43 }
 0x272   : > { %v1293_v8 = vmul.f32 %v2896_v27, %v1266_v0  ;;  %v1294_v46 = vmul.f32 %v2899_v13, %v1270_v41  ;;  %v1120_v36 = vmul.f32 %v2857_v3, %v1094_v55  ;;  %v1265_v14 = vsel %vm1264_vm7, %v2802_v21, %v2812_v60  ;;  %v3236_v41 = vld [vmem:[#allocation8_spill] sm:$0xff] }
 0x273   : > { %v1145_v9 = vmul.f32 %v3236_v41, %v1121_v56  ;;  %v1069_v21 = vadd.f32 %v1061_v11, %v2694_v63  ;;  %v1070_v60 = vadd.f32 %v1062_v52, %v2696_v18  ;;  %v3239_v56 = vld [vmem:[#allocation16_spill] sm:$0xff] }
 0x274   : > { %v1317_v7 = vmul.f32 %v3233_v31, %v1293_v8  ;;  %v1318_v25 = vmul.f32 %v3233_v31, %v1294_v46  ;;  %v1165_v24 = vpop.permute.xlu1 %1164  ;;  %v1144_v62 = vmul.f32 %v3236_v41, %v1120_v36  ;;  %v1291_v8 = vmul.f32 %v2896_v27, %v1265_v14  ;;  %v1261_v14 = vpop.permute.xlu0 %1260 }
 0x275   : > { %v1292_v46 = vmul.f32 %v2899_v13, %v1269_v38  ;;  %v1153_v45 = vadd.f32 %v1145_v9, %v1070_v60 }
 0x276   : > { %v1325_v23 = vadd.f32 %v1317_v7, %v1242_v16  ;;  %v1326_v10 = vadd.f32 %v1318_v25, %v1243_v30  ;;  %v3237_v30 = vld [vmem:[#allocation9_spill] sm:$0xff]  ;;  %v1152_v25 = vadd.f32 %v1144_v62, %v1069_v21  ;;  %v1315_v55 = vmul.f32 %v3238_v12, %v1291_v8 }
 0x277   : > { %v1232_v31 = vmul.f32 %v3237_v30, %v1208_v29  ;;  %v1233_v7 = vmul.f32 %v3237_v30, %v1209_v2  ;;  %v1316_v43 = vmul.f32 %v3238_v12, %v1292_v46  ;;  %v1096_v2 = vsel %vm1093_vm4, %v2832_v51, %v2789_v50  ;;  %v3240_v30 = vld [vmem:[#allocation11_spill] sm:$0xff] }
 0x278   : > { %v1173_v40 = vpop.permute.xlu1 %1172  ;;  %v2955_v26 = vadd.f32 %v1400_v4, %v1325_v23  ;;  %v2957_v28 = vadd.f32 %v1401_v17, %v1326_v10  ;;  %v1336_v41 = vpop.permute.xlu0 %1335  ;;  %v1124_v62 = vmul.f32 %v2857_v3, %v1096_v2 }
 0x279   : > { %v1240_v18 = vadd.f32 %v1232_v31, %v1152_v25  ;;  %v1241_v23 = vadd.f32 %v1233_v7, %v1153_v45  ;;  %v1179_v8 = vsel %vm1176_vm5, %v1165_v24, %v1173_v40  ;;  %v1183_v46 = vsel %vm1176_vm5, %v1173_v40, %v1165_v24  ;;  %v3241_v45 = vld [vmem:[#allocation15_spill] sm:$0xff] }
 0x27a   : > { %v1417_v0 = vadd.f32 %v2957_v28, %v2955_v26  ;;  %v1213_v21 = vmul.f32 %v2869_v58, %v1183_v46  ;;  %v1148_v31 = vmul.f32 %v3240_v30, %v1124_v62 }
 0x27b   : > { %v1323_v5 = vadd.f32 %v1315_v55, %v1240_v18  ;;  %v1324_v36 = vadd.f32 %v1316_v43, %v1241_v23  ;;  %v1101_v18 = vsel %vm1093_vm4, %v2871_v61, %v2849_v59 }
 0x27c   : > { %1418 = vadd.xlane.f32.xlu1 %v1417_v0  ;;  %v1332_v16 = vpop.permute.xlu1 %1331  ;;  %v1100_v0 = vsel %vm1093_vm4, %v2789_v50, %v2832_v51  ;;  %v1344_v51 = vpop.permute.xlu0 %1343  ;;  %v1237_v24 = vmul.f32 %v3241_v45, %v1213_v21  ;;  %v1156_v55 = vadd.f32 %v1148_v31, %v2808_v35 }
 0x27d   : > { %v1125_v9 = vmul.f32 %v2860_v6, %v1100_v0  ;;  %v1350_v7 = vsel %vm1347_vm6, %v1336_v41, %v1344_v51  ;;  %v1354_v25 = vsel %vm1347_vm6, %v1344_v51, %v1336_v41 }
 0x27e   : > { %v1378_v23 = vmul.f32 %v2902_v34, %v1350_v7 }
 0x27f   : > { %v1149_v50 = vmul.f32 %v3240_v30, %v1125_v9 }
 0x280   : > { %v1340_v4 = vpop.permute.xlu1 %1339 }
 0x281   : > { %v1348_v17 = vsel %vm1347_vm6, %v1332_v16, %v1340_v4  ;;  %v1352_v63 = vsel %vm1347_vm6, %v1340_v4, %v1332_v16  ;;  %v1212_v16 = vmul.f32 %v2866_v19, %v1179_v8  ;;  %v1157_v43 = vadd.f32 %v1149_v50, %v2810_v20 }
 0x282   : > { %v1374_v10 = vmul.f32 %v2902_v34, %v1348_v17  ;;  %v1375_v32 = vmul.f32 %v2905_v42, %v1352_v63  ;;  %v1097_v63 = vsel %vm1093_vm4, %v2849_v59, %v2871_v61  ;;  %v1180_v8 = vsel %vm1176_vm5, %v2822_v49, %v2830_v47 }
 0x283   : > { %v1236_v12 = vmul.f32 %v3241_v45, %v1212_v16  ;;  %v3243_v16 = vld [vmem:[#allocation10_spill] sm:$0xff] }
 0x284   : > { %v1398_v57 = vmul.f32 %v3239_v56, %v1374_v10  ;;  %v1399_v11 = vmul.f32 %v3239_v56, %v1375_v32  ;;  %v1379_v10 = vmul.f32 %v2905_v42, %v1354_v25 }
 0x285   : > { %v1244_v32 = vadd.f32 %v1236_v12, %v1156_v55 }
 0x286   : > { %v2993_v38 = vadd.f32 %v1398_v57, %v1323_v5  ;;  %v2995_v52 = vadd.f32 %v1399_v11, %v1324_v36  ;;  %v1245_v5 = vadd.f32 %v1237_v24, %v1157_v43  ;;  %v3242_v36 = vld [vmem:[#allocation19_spill] sm:$0xff] }
 0x288   : > { %v1414_v29 = vadd.f32 %v2995_v52, %v2993_v38 }
 0x28a   : > { %1415 = vadd.xlane.f32.xlu0 %v1414_v29  ;;  %v1127_v29 = vmul.f32 %v2860_v6, %v1101_v18 }
 0x291   : > { %v1392_v60 = vpop.permute.xlu1 %1391 }
 0x292   : > { %v1402_v59 = vmul.f32 %v1392_v60, %v1378_v23  ;;  %v1403_v61 = vmul.f32 %v1392_v60, %v1379_v10  ;;  %v1151_v60 = vmul.f32 %v3243_v16, %v1127_v29 }
 0x294   : > { %v1159_v12 = vadd.f32 %v1151_v60, %v2826_v15 }
 0x295   : > { %v1253_v40 = vpop.permute.xlu1 %1252 }
 0x296   : > { %v1267_v4 = vsel %vm1264_vm7, %v1253_v40, %v1261_v14  ;;  %v1271_v17 = vsel %vm1264_vm7, %v1261_v14, %v1253_v40  ;;  %v1126_v14 = vmul.f32 %v2857_v3, %v1097_v63  ;;  %v1184_v3 = vsel %vm1176_vm5, %v2830_v47, %v2822_v49  ;;  %v3244_v40 = vld [vmem:[#allocation14_spill] sm:$0xff] }
 0x297   : > { %v1295_v35 = vmul.f32 %v2896_v27, %v1267_v4  ;;  %v1296_v20 = vmul.f32 %v2899_v13, %v1271_v17  ;;  %v1214_v49 = vmul.f32 %v2866_v19, %v1180_v8  ;;  %v1215_v47 = vmul.f32 %v2869_v58, %v1184_v3  ;;  %v3245_v4 = vld [vmem:[#allocation18_spill] sm:$0xff] }
 0x298   : > { %v1150_v21 = vmul.f32 %v3243_v16, %v1126_v14 }
 0x299   : > { %v1319_v56 = vmul.f32 %v3242_v36, %v1295_v35  ;;  %v1320_v57 = vmul.f32 %v3242_v36, %v1296_v20  ;;  %v1255_v11 = vpop.permute.xlu1 %1254  ;;  %v1238_v55 = vmul.f32 %v3244_v40, %v1214_v49  ;;  %v1239_v43 = vmul.f32 %v3244_v40, %v1215_v47 }
 0x29a   : > { %v1158_v45 = vadd.f32 %v1150_v21, %v2824_v39  ;;  %v1430_v36 = vmul.f32 %v2993_v38, %v2993_v38 }
 0x29b   : > { %v1327_v2 = vadd.f32 %v1319_v56, %v1244_v32  ;;  %v1328_v0 = vadd.f32 %v1320_v57, %v1245_v5  ;;  %v1247_v63 = vadd.f32 %v1239_v43, %v1159_v12  ;;  %v1432_v56 = vmul.f32 %v2955_v26, %v2955_v26 }
 0x29c   : > { %v1246_v39 = vadd.f32 %v1238_v55, %v1158_v45 }
 0x29d   : > { %v1263_v41 = vpop.permute.xlu1 %1262  ;;  %v3045_v62 = vadd.f32 %v1402_v59, %v1327_v2  ;;  %v3047_v9 = vadd.f32 %v1403_v61, %v1328_v0  ;;  %v2049_v59 = vmov 0.0   ;;  %v1551_v61 = vld [vmem:[%s3189_s6] sm:$0xf] }
 0x29e   : > { %v1268_v6 = vsel %vm1264_vm7, %v1255_v11, %v1263_v41  ;;  %v1272_v46 = vsel %vm1264_vm7, %v1263_v41, %v1255_v11  ;;  %1625 = vmatprep.mubr.f32.mxu0 %v2049_v59 }
 0x29f   : > { %v1420_v30 = vadd.f32 %v3047_v9, %v3045_v62  ;;  %v1434_v31 = vmul.f32 %v3045_v62, %v3045_v62  ;;  %v1435_v50 = vmul.f32 %v3047_v9, %v3047_v9  ;;  %v1297_v51 = vmul.f32 %v2896_v27, %v1268_v6 }
 0x2a0   : > { %v1298_v7 = vmul.f32 %v2899_v13, %v1272_v46 }
 0x2a1   : > { %1421 = vadd.xlane.f32.xlu1 %v1420_v30  ;;  %v1338_v25 = vpop.permute.xlu1 %1337  ;;  %v1444_v24 = vadd.f32 %v1435_v50, %v1434_v31  ;;  %v1321_v17 = vmul.f32 %v3245_v4, %v1297_v51 }
 0x2a2   : > { %v1322_v19 = vmul.f32 %v3245_v4, %v1298_v7 }
 0x2a3   : > { %v1329_v35 = vadd.f32 %v1321_v17, %v1246_v39 }
 0x2a4   : > { %v1330_v20 = vadd.f32 %v1322_v19, %v1247_v63 }
 0x2a5   : > { %1445 = vadd.xlane.f32.xlu1 %v1444_v24  ;;  %v1346_v58 = vpop.permute.xlu1 %1345 }
 0x2a6   : > { %v1351_v27 = vsel %vm1347_vm6, %v1338_v25, %v1346_v58  ;;  %v1355_v13 = vsel %vm1347_vm6, %v1346_v58, %v1338_v25 }
 0x2a7   : > { %v1380_v15 = vmul.f32 %v2902_v34, %v1351_v27  ;;  %v1381_v18 = vmul.f32 %v2905_v42, %v1355_v13  ;;  %v1431_v34 = vmul.f32 %v2995_v52, %v2995_v52 }
 0x2a9   : > { %v1404_v23 = vmul.f32 %v2983_v33, %v1380_v15  ;;  %v1405_v10 = vmul.f32 %v2983_v33, %v1381_v18  ;;  %v1438_v42 = vadd.f32 %v1431_v34, %v1430_v36  ;;  %v1433_v33 = vmul.f32 %v2957_v28, %v2957_v28 }
 0x2ab   : > { %v3087_v32 = vadd.f32 %v1404_v23, %v1329_v35  ;;  %v3089_v5 = vadd.f32 %v1405_v10, %v1330_v20  ;;  %v1441_v57 = vadd.f32 %v1433_v33, %v1432_v56 }
 0x2ad   : > { %v1423_v1 = vadd.f32 %v3089_v5, %v3087_v32  ;;  %v1436_v11 = vmul.f32 %v3087_v32, %v3087_v32  ;;  %v1437_v14 = vmul.f32 %v3089_v5, %v3089_v5 }
 0x2af   : > { %1424 = vadd.xlane.f32.xlu0 %v1423_v1  ;;  %v1447_v29 = vadd.f32 %v1437_v14, %v1436_v11 }
 0x2b3   : > { %1439 = vadd.xlane.f32.xlu0 %v1438_v42 }
 0x2b6   : > { %1554 = vperm.xlu1 %1879, %v1551_v61  }
 0x2b7   : > { %1442 = vadd.xlane.f32.xlu0 %v1441_v57 }
 0x2bb   : > { %1448 = vadd.xlane.f32.xlu0 %v1447_v29  ;;  %v3246_v29 = vld [vmem:[#allocation6_spill] sm:$0xff] }
 0x309   : > { %v1419_v2 = vpop.xlane.xlu1 %1418 }
 0x30a   : > { %v1427_v50 = vmul.f32 0.00390625, %v1419_v2 }
 0x30c   : > { %v1455_v24 = vmul.f32 %v1427_v50, %v1427_v50  ;;  %v1465_v34 = vsub.f32 %v2957_v28, %v1427_v50  ;;  %v3247_v28 = vld [vmem:[#allocation5_spill] sm:$0xff] }
 0x317   : > { %v1416_v16 = vpop.xlane.xlu0 %1415 }
 0x318   : > { %v1426_v30 = vmul.f32 0.00390625, %v1416_v16 }
 0x31a   : > { %v1454_v49 = vmul.f32 %v1426_v30, %v1426_v30  ;;  %v1462_v35 = vsub.f32 %v2993_v38, %v1426_v30  ;;  %v1463_v20 = vsub.f32 %v2995_v52, %v1426_v30 }
 0x32e   : > { %v1422_v0 = vpop.xlane.xlu1 %1421 }
 0x32f   : > { %v1428_v41 = vmul.f32 0.00390625, %v1422_v0 }
 0x331   : > { %v1456_v6 = vmul.f32 %v1428_v41, %v1428_v41  ;;  %v1467_v4 = vsub.f32 %v3047_v9, %v1428_v41  ;;  %v1466_v39 = vsub.f32 %v3045_v62, %v1428_v41  ;;  %v1464_v62 = vsub.f32 %v2955_v26, %v1427_v50 }
 0x332   : > { %v1446_v8 = vpop.xlane.xlu1 %1445 }
 0x333   : > { %v1452_v3 = vmul.f32 0.00390625, %v1446_v8 }
 0x335   : > { %v1460_v46 = vsub.f32 %v1452_v3, %v1456_v6 }
 0x337   : > { %v1472_v21 = vadd.f32 1e-06, %v1460_v46 }
 0x339   : > { %1921 = vrsqrt.f32 %v1472_v21 }
 0x33c   : > { %v1425_v60 = vpop.xlane.xlu0 %1424 }
 0x33d   : > { %v1429_v25 = vmul.f32 0.00390625, %v1425_v60 }
 0x33f   : > { %v1457_v19 = vmul.f32 %v1429_v25, %v1429_v25  ;;  %v1468_v11 = vsub.f32 %v3087_v32, %v1429_v25 }
 0x340   : > { %v1440_v31 = vpop.xlane.xlu0 %1439 }
 0x341   : > { %v1450_v47 = vmul.f32 0.00390625, %v1440_v31 }
 0x343   : > { %v1458_v51 = vsub.f32 %v1450_v47, %v1454_v49  ;;  %v1922_v55 = vpop.eup %1921 }
 0x344   : > { %v1443_v7 = vpop.xlane.xlu0 %1442  ;;  %v1483_v13 = vmul.f32 %v1922_v55, %v1467_v4  ;;  %v1482_v18 = vmul.f32 %v1922_v55, %v1466_v39 }
 0x345   : > { %v1470_v45 = vadd.f32 1e-06, %v1458_v51  ;;  %v1451_v12 = vmul.f32 0.00390625, %v1443_v7 }
 0x346   : > { %v3111_v15 = vadd.f32 %v1483_v13, %v2413_v22  ;;  %v3117_v36 = vadd.f32 %v1482_v18, %v2417_v37  ;;  %v1469_v37 = vsub.f32 %v3089_v5, %v1429_v25 }
 0x347   : > { %1923 = vrsqrt.f32 %v1470_v45  ;;  %v1459_v40 = vsub.f32 %v1451_v12, %v1455_v24 }
 0x348   : > { %v1449_v43 = vpop.xlane.xlu0 %1448  ;;  %v1765_v1 = vmul.f32 -1.442695, %v3111_v15  ;;  %v1764_v14 = vmul.f32 -1.442695, %v3117_v36 }
 0x349   : > { %v1471_v17 = vadd.f32 1e-06, %v1459_v40  ;;  %v1453_v58 = vmul.f32 0.00390625, %v1449_v43 }
 0x34b   : > { %1925 = vrsqrt.f32 %v1471_v17  ;;  %v1461_v27 = vsub.f32 %v1453_v58, %v1457_v19 }
 0x34d   : > { %v1473_v63 = vadd.f32 1e-06, %v1461_v27 }
 0x34f   : > { %1927 = vrsqrt.f32 %v1473_v63 }
 0x350   : > { %1929 = vpow2.f32 %v1765_v1  ;;  %v1550_v1 = vld [vmem:[%s3188_s5] sm:$0xf] }
 0x351   : > { %v1924_v23 = vpop.eup %1923 }
 0x352   : > { %v1479_v9 = vmul.f32 %v1924_v23, %v1463_v20  ;;  %v1478_v10 = vmul.f32 %v1924_v23, %v1462_v35 }
 0x354   : > { %v1487_v22 = vadd.f32 %v1479_v9, %v2403_v53  ;;  %v1486_v42 = vadd.f32 %v1478_v10, %v2397_v44 }
 0x355   : > { %v1926_v56 = vpop.eup %1925 }
 0x356   : > { %v1481_v38 = vmul.f32 %v1926_v56, %v1465_v34  ;;  %v1761_v33 = vmul.f32 -1.442695, %v1487_v22  ;;  %v1480_v52 = vmul.f32 %v1926_v56, %v1464_v62  ;;  %v1760_v57 = vmul.f32 -1.442695, %v1486_v42  ;;  %v1555_v62 = vpop.permute.xlu1 %1554 }
 0x358   : > { %v1489_v26 = vadd.f32 %v1481_v38, %v3246_v29  ;;  %1931 = vpow2.f32 %v1761_v33  ;;  %v1488_v59 = vadd.f32 %v1480_v52, %v3247_v28 }
 0x359   : > { %v1928_v53 = vpop.eup %1927  ;;  %1933 = vpow2.f32 %v1760_v57 }
 0x35a   : > { %v1763_v44 = vmul.f32 -1.442695, %v1489_v26  ;;  %v1762_v61 = vmul.f32 -1.442695, %v1488_v59  ;;  %v1485_v2 = vmul.f32 %v1928_v53, %v1469_v37  ;;  %v1484_v0 = vmul.f32 %v1928_v53, %v1468_v11  ;;  %v1930_v3 = vpop.eup %1929 }
 0x35b   : > { %1935 = vpow2.f32 %v1764_v14  ;;  %v1523_v49 = vadd.f32 1.0, %v1930_v3 }
 0x35c   : > { %1937 = vpow2.f32 %v1763_v44  ;;  %v1493_v32 = vadd.f32 %v1485_v2, %v2429_v54  ;;  %v1492_v41 = vadd.f32 %v1484_v0, %v2423_v48 }
 0x35d   : > { %1939 = vpow2.f32 %v1762_v61 }
 0x35e   : > { %v1767_v8 = vmul.f32 -1.442695, %v1493_v32  ;;  %v1766_v5 = vmul.f32 -1.442695, %v1492_v41 }
 0x360   : > { %1941 = vpow2.f32 %v1767_v8 }
 0x361   : > { %1943 = vpow2.f32 %v1766_v5  ;;  %v1967_v5 = vld [vmem:[%s2226_s25] sm:$0xff]  ;;  %s1669_s25 = scalar_lea.sflag [#allocation3], %s296_s17 }
 0x362   : > { %v1932_v6 = vpop.eup %1931 }
 0x363   : > { %v1934_v46 = vpop.eup %1933  ;;  %v1519_v16 = vadd.f32 1.0, %v1932_v6 }
 0x364   : > { %v1518_v21 = vadd.f32 1.0, %v1934_v46 }
 0x365   : > { %v1936_v60 = vpop.eup %1935  ;;  %1945 = vrcp.f32 %v1519_v16 }
 0x366   : > { %v1938_v30 = vpop.eup %1937  ;;  %1947 = vrcp.f32 %v1518_v21  ;;  %v1522_v54 = vadd.f32 1.0, %v1936_v60 }
 0x367   : > { %v1940_v31 = vpop.eup %1939  ;;  %v1521_v50 = vadd.f32 1.0, %v1938_v30 }
 0x368   : > { %v1520_v47 = vadd.f32 1.0, %v1940_v31 }
 0x369   : > { %1949 = vrcp.f32 %v1521_v50 }
 0x36a   : > { %v1942_v48 = vpop.eup %1941  ;;  %1951 = vrcp.f32 %v1520_v47 }
 0x36b   : > { %v1944_v51 = vpop.eup %1943  ;;  %v1525_v7 = vadd.f32 1.0, %v1942_v48  ;;  %1953 = vrcp.f32 %v1523_v49 }
 0x36c   : > { %v1524_v25 = vadd.f32 1.0, %v1944_v51  ;;  %1955 = vrcp.f32 %v1522_v54 }
 0x36d   : > { %1957 = vrcp.f32 %v1525_v7 }
 0x36e   : > { %1959 = vrcp.f32 %v1524_v25 }
 0x36f   : > { %v1946_v45 = vpop.eup %1945 }
 0x370   : > { %v1948_v12 = vpop.eup %1947  ;;  %v1543_v55 = vmul.f32 %v1946_v45, %v1487_v22 }
 0x371   : > { %v1542_v17 = vmul.f32 %v1948_v12, %v1486_v42 }
 0x373   : > { %v1950_v24 = vpop.eup %1949 }
 0x374   : > { %v1952_v40 = vpop.eup %1951  ;;  %v1545_v43 = vmul.f32 %v1950_v24, %v1489_v26 }
 0x375   : > { %v1954_v4 = vpop.eup %1953  ;;  %v1544_v19 = vmul.f32 %v1952_v40, %v1488_v59 }
 0x376   : > { %v1956_v58 = vpop.eup %1955  ;;  %v1777_v27 = vpack.c.bf16 %v1545_v43, %v1543_v55  ;;  %v1547_v18 = vmul.f32 %v1954_v4, %v3111_v15 }
 0x377   : > { %v1958_v13 = vpop.eup %1957  ;;  %v1779_v39 = vpack.c.bf16 %v1544_v19, %v1542_v17  ;;  %v1546_v20 = vmul.f32 %v1956_v58, %v3117_v36 }
 0x378   : > { %v1960_v63 = vpop.eup %1959  ;;  %1778 = vmatprep.subr.bf16.mxu0 %v1777_v27  ;;  %v1549_v35 = vmul.f32 %v1958_v13, %v1493_v32 }
 0x379   : > { %1780 = vmatpush1.bf16.msra.mxu0 %v1779_v39  ;;  %v1548_v23 = vmul.f32 %v1960_v63, %v1492_v41 }
 0x37a   : > { %v1781_v9 = vpack.c.bf16 %v1549_v35, %v1547_v18 }
 0x37b   : > { %v1783_v10 = vpack.c.bf16 %v1548_v23, %v1546_v20 }
 0x37c   : > { %1782 = vmatprep.subr.bf16.mxu0 %v1781_v9 }
 0x37d   : > { %1784 = vmatpush1.bf16.msra.mxu0 %v1783_v10 }
 0x380   : > { %1768 = vmatmul.mubr.msk.f32.vlgmr.msra.gmra.mrb[0].mxu0 %vm1557_vm8, %v1550_v1 }
 0x453   : > { %v1627_v34 = vpop.f32.mrb[0].mxu0 }
 0x454   : > { %v1628_v22 = vadd.f32 %v1627_v34, %v1555_v62  ;;  %v1629_v15 = vpop.f32.mrb[1].mxu0 }
 0x455   : > { %v1630_v42 = vadd.f32 %v1629_v15, %v1555_v62 }
 0x456   : > { %v1639_v56 = vmul.f32 %v1628_v22, %v1628_v22  ;;  %v1633_v38 = vsel %vm1632_vm9, %v1628_v22, 0.0 }
 0x457   : > { %v1640_v36 = vmul.f32 %v1630_v42, %v1630_v42  ;;  %v1634_v33 = vsel %vm1632_vm9, %v1630_v42, 0.0 }
 0x458   : > { %v1635_v52 = vadd.f32 %v1634_v33, %v1633_v38  ;;  %v1641_v57 = vsel %vm1632_vm9, %v1639_v56, 0.0 }
 0x459   : > { %v1642_v11 = vsel %vm1632_vm9, %v1640_v36, 0.0 }
 0x45a   : > { %1636 = vadd.xlane.f32.xlu0 %v1635_v52  ;;  %v1643_v14 = vadd.f32 %v1642_v11, %v1641_v57 }
 0x45e   : > { %1644 = vadd.xlane.f32.xlu0 %v1643_v14 }
 0x4e7   : > { %v1637_v37 = vpop.xlane.xlu0 %1636 }
 0x4e8   : > { %v1638_v29 = vmul.f32 0.00390625, %v1637_v37 }
 0x4ea   : > { %v1647_v28 = vmul.f32 %v1638_v29, %v1638_v29  ;;  %v1649_v61 = vsub.f32 %v1628_v22, %v1638_v29  ;;  %v1650_v2 = vsub.f32 %v1630_v42, %v1638_v29 }
 0x4eb   : > { %v1645_v26 = vpop.xlane.xlu0 %1644 }
 0x4ec   : > { %v1646_v59 = vmul.f32 0.00390625, %v1645_v26 }
 0x4ee   : > { %v1648_v53 = vsub.f32 %v1646_v59, %v1647_v28 }
 0x4f0   : > { %v1651_v44 = vadd.f32 1e-06, %v1648_v53 }
 0x4f2   : > { %1961 = vrsqrt.f32 %v1651_v44 }
 0x4fc   : > { %v1962_v0 = vpop.eup %1961 }
 0x4fd   : > { %v1653_v32 = vmul.f32 %v1962_v0, %v1649_v61  ;;  %v1654_v41 = vmul.f32 %v1962_v0, %v1650_v2 }
 0x4ff   : > { %v1657_v8 = vcombine.low %v1653_v32, %v1654_v41 }
 0x501   : > { %v1659_v3 = vadd.f32 %v1967_v5, %v1657_v8 }
 0x503   : > { %v1769_v6 = vmul.f32 -1.442695, %v1659_v3 }
 0x505   : > { %1963 = vpow2.f32 %v1769_v6 }
 0x50f   : > { %v1964_v46 = vpop.eup %1963 }
 0x510   : > { %v1663_v16 = vadd.f32 1.0, %v1964_v46 }
 0x512   : > { %1965 = vrcp.f32 %v1663_v16 }
 0x51c   : > { %v1966_v21 = vpop.eup %1965 }
 0x51d   : > { %v1666_v60 = vmul.f32 %v1966_v21, %v1659_v3 }
 0x51f   : > { %1667 = vst [vmem:[%s298_s20] sm:$0xff] %v1666_v60 }
 0x520   : > { %1981 = shalt.err (!%p1978_p3)
}
 0x521   : > { %s1982_s13 = scalar_lea.hbm %s3141_s24, 128  ;;  %s1986_s19 = scalar_lea.hbm %s3191_s8, 256 }
 0x522   : > { %p1983_p4 = scmp.ne.s32.totalorder %s3141_s24, %s1982_s13  ;;  %p1987_p9 = scmp.lt.u32.totalorder %s3141_s24, %s3191_s8 }
 0x523   : > { %p1988_p10 = scmp.lt.u32.totalorder %s1986_s19, %s1982_s13  ;;  %p1990_p12 = scmp.lt.u32.totalorder %s1982_s13, %s3141_s24 }
 0x524   : > { %p1984_p7 = pnand %p1983_p4, %p2134_p5 }
 0x525   : > { %p1989_p11 = por %p1988_p10, %p1987_p9 }
 0x526   : > { %p1985_p8 = pneg %p1984_p7 }
 0x527   : > { %p1991_p13 = por %p1990_p12, %p1989_p11 }
 0x529   : > { %p1992_p0 = pnand %p1991_p13, %p1985_p8 }
 0x52b   : > { %1995 = shalt.err (!%p1992_p0)
}
 0x52c   : > { %1785 = dma.vmem_to_hbm [thread:$0]  (%p2134_p5), %s3143_s21, 128, %s3141_s24, %s1669_s25  }
 0x52d PF: > { %p1791_p1 = scmp.ge.s32.totalorder %s2030_s30, 2  ;;  %s1695_s23 = sand.u32 1, %s2018_s27  }
 0x52e   : > { %s1696_s26 = scalar_lea.sflag [#allocation3], %s1695_s23 }
 0x52f   : > { %p1788_p2 = pnand %p1791_p1, %p2138_p6 }
 0x531   : > { %2013 = dma.done.wait (!%p1788_p2), %s1696_s26, 128  }
 0x532   : > { %2015 = vsyncadd (!%p1788_p2), %s1696_s26, 4294967168  ;;  %p18_p3 = scmp.ge.s32.totalorder %s2121_s11, 4   ;;  %s3248_s27 = smov %s2022_s28 }
 0x533   : > { %s3249_s28 = smov %s2026_s29  ;;  %s3250_s29 = smov %s2132_s14 }
 0x534   : > { %s3251_s30 = smov %s2121_s11  ;;  %20 = sbr.rel (!%p18_p3) target bundleno = 3 (0x3), region = 87 }
 0x53b   :  { %1701 = vsyncpa [#allocation3], 1 }
 0x53c   :  { %1703 = vsyncpa [#allocation3 + $0x1], 1 }

</bundles_post_ra>
